<compile_context>
chip_gen: v7x
topology: tpu7x:2x2x1
jax: 0.10.0
libtpu: 0.0.40
codegen_flags: <defaults>
</compile_context>

<pallas_src>
import jax
import jax.numpy as jnp
from jax.experimental import pallas as pl
from jax.experimental.pallas import tpu as pltpu


# ----------------------------------------------------------------------------
# Fused EncDec Pallas kernel (encoder GRU -> decoder GRU -> Linear scoring)
# ----------------------------------------------------------------------------
def _encdec_kernel(en_gi_ref, nl_len_ref, de_gi_ref, lb_len_ref,
                   wh_enc_ref, bhn_enc_ref,
                   wh_dec_ref, bhn_dec_ref,
                   w_out_ref, b_out_ref,
                   score_ref,
                   dec_out_ref):
    """
    en_gi_ref : (S, B, 3H)  hoisted encoder input projections (+ folded biases)
    nl_len_ref: (B, 1)      int32 source lengths
    de_gi_ref : (T, B, 3H)  hoisted decoder input projections (+ folded biases)
    lb_len_ref: (B, 1)      int32 label lengths
    wh_*_ref  : (H, 3H)     fused hidden weights, gate order [r | z | n]
    bhn_*_ref : (1, H)      hidden bias of n gate (gated by r -> not foldable)
    w_out_ref : (H, Lp)     hidden2tag weight, lane-padded (Lp multiple of 128)
    b_out_ref : (1, Lp)
    score_ref : (T*B, Lp)   output scores, flat time-major, lane-dense
    dec_out_ref: (T*B, H)   VMEM scratch holding per-step decoder outputs
    """
    S, B, _ = en_gi_ref.shape
    T = de_gi_ref.shape[0]
    H = wh_enc_ref.shape[0]

    def gru_cell(gi, h, wh, bhn, m):
        # Single fused MXU issue per time step: (B, H) @ (H, 3H).
        gh = jnp.dot(h, wh, preferred_element_type=jnp.float32)
        r = jax.nn.sigmoid(gi[:, 0 * H:1 * H] + gh[:, 0 * H:1 * H])
        z = jax.nn.sigmoid(gi[:, 1 * H:2 * H] + gh[:, 1 * H:2 * H])
        n = jnp.tanh(gi[:, 2 * H:3 * H] + r * (gh[:, 2 * H:3 * H] + bhn))
        h_cand = (1.0 - z) * n + z * h
        # packed-sequence semantics: freeze hidden / zero output past length.
        h_new = m * h_cand + (1.0 - m) * h
        return h_new, m * h_cand

    # ----------------------------- encoder -----------------------------------
    wh_enc = wh_enc_ref[...]
    bhn_enc = bhn_enc_ref[...]
    nl_len = nl_len_ref[...]                        # (B, 1) int32
    h = jnp.zeros((B, H), jnp.float32)              # h0 == 0, no DMA needed
    for t in range(S):                              # fully unrolled static loop
        m = (nl_len > t).astype(jnp.float32)        # in-kernel mask, no DMA
        h, _ = gru_cell(en_gi_ref[t], h, wh_enc, bhn_enc, m)

    # ----------------------- decoder (teacher forcing) -----------------------
    wh_dec = wh_dec_ref[...]
    bhn_dec = bhn_dec_ref[...]
    lb_len = lb_len_ref[...]
    for t in range(T):                              # fully unrolled static loop
        m = (lb_len > t).astype(jnp.float32)
        h, out_t = gru_cell(de_gi_ref[t], h, wh_dec, bhn_dec, m)
        # Park the per-step output; scoring is done off the serial chain.
        dec_out_ref[pl.ds(t * B, B), :] = out_t

    # ---------------- hidden2tag scoring: one batched matmul -----------------
    # (T*B, H) @ (H, Lp) in a single MXU issue, then one fully lane-dense
    # (T*B, Lp) store (T*B multiple of 8 sublanes, Lp multiple of 128 lanes).
    # Padded time positions (out_t == 0) score to the bias, matching
    # Linear(pad_packed zeros) = bias in the reference.
    outs = dec_out_ref[...]
    score_ref[...] = (jnp.dot(outs, w_out_ref[...],
                              preferred_element_type=jnp.float32)
                      + b_out_ref[...])


def encdec_pallas(en_gi, nl_len_col, de_gi, lb_len_col,
                  wh_enc, bhn_enc, wh_dec, bhn_dec, w_out_p, b_out_p):
    T, B, _ = de_gi.shape
    H = wh_dec.shape[0]
    Lp = w_out_p.shape[1]
    # Single pallas_call, no grid: every operand is one whole-array block
    # resident in VMEM (default BlockSpec), so there is no per-step launch or
    # DMA overhead and the encoder->decoder hidden handoff never touches HBM.
    return pl.pallas_call(
        _encdec_kernel,
        out_shape=jax.ShapeDtypeStruct((T * B, Lp), jnp.float32),
        scratch_shapes=[pltpu.VMEM((T * B, H), jnp.float32)],
        compiler_params=pltpu.CompilerParams(vmem_limit_bytes=64 * 1024 * 1024),
    )(en_gi, nl_len_col, de_gi, lb_len_col,
      wh_enc, bhn_enc, wh_dec, bhn_dec, w_out_p, b_out_p)


# ----------------------------------------------------------------------------
# Parameter construction (deterministic, synthetic) + cuDNN-style fusion
# ----------------------------------------------------------------------------
def make_gru_params(key, in_dim, hid_dim):
    ks = jax.random.split(key, 12)
    scale = 0.1
    wir = scale * jax.random.normal(ks[0], (in_dim, hid_dim), jnp.float32)
    wiz = scale * jax.random.normal(ks[1], (in_dim, hid_dim), jnp.float32)
    win = scale * jax.random.normal(ks[2], (in_dim, hid_dim), jnp.float32)
    whr = scale * jax.random.normal(ks[3], (hid_dim, hid_dim), jnp.float32)
    whz = scale * jax.random.normal(ks[4], (hid_dim, hid_dim), jnp.float32)
    whn = scale * jax.random.normal(ks[5], (hid_dim, hid_dim), jnp.float32)
    bir = scale * jax.random.normal(ks[6], (1, hid_dim), jnp.float32)
    biz = scale * jax.random.normal(ks[7], (1, hid_dim), jnp.float32)
    bin_ = scale * jax.random.normal(ks[8], (1, hid_dim), jnp.float32)
    bhr = scale * jax.random.normal(ks[9], (1, hid_dim), jnp.float32)
    bhz = scale * jax.random.normal(ks[10], (1, hid_dim), jnp.float32)
    bhn = scale * jax.random.normal(ks[11], (1, hid_dim), jnp.float32)
    return (wir, wiz, win, whr, whz, whn, bir, biz, bin_, bhr, bhz, bhn)


def fuse_gru_params(p):
    """PyTorch per-gate GRU params -> fused (cuDNN-style) params.

    Returns (W_i_fused (E,3H), W_h_fused (H,3H), b_i_fused (1,3H), b_hn (1,H)).
    b_hr / b_hz are folded into the input-projection bias (they enter the
    pre-activations additively); b_hn cannot be folded (it is gated by r).
    """
    (wir, wiz, win, whr, whz, whn, bir, biz, bin_, bhr, bhz, bhn) = p
    wi = jnp.concatenate([wir, wiz, win], axis=1)
    wh = jnp.concatenate([whr, whz, whn], axis=1)
    bi = jnp.concatenate([bir + bhr, biz + bhz, bin_], axis=1)
    return wi, wh, bi, bhn


def make_params(key, src_vocab, num_labels, emb_dim, hid_dim):
    k_semb, k_lemb, k_enc, k_dec, k_out = jax.random.split(key, 5)
    src_emb = 0.1 * jax.random.normal(k_semb, (src_vocab, emb_dim), jnp.float32)
    src_emb = src_emb.at[0].set(0.0)          # padding_idx = 0
    lab_emb = 0.1 * jax.random.normal(k_lemb, (num_labels, emb_dim), jnp.float32)
    lab_emb = lab_emb.at[0].set(0.0)          # padding_idx = 0
    return {
        "src_emb": src_emb,
        "lab_emb": lab_emb,
        "enc_gru": make_gru_params(k_enc, emb_dim, hid_dim),
        "dec_gru": make_gru_params(k_dec, emb_dim, hid_dim),
        "w_out": 0.1 * jax.random.normal(k_out, (hid_dim, num_labels), jnp.float32),
        "b_out": jnp.zeros((1, num_labels), jnp.float32),
    }


# ----------------------------------------------------------------------------
# EncDec.forward (teacher_force=True path)
# ----------------------------------------------------------------------------
@jax.jit
def encdec_forward(params, nl_tensor, nl_len_tensor, lb_tensor):
    B, S = nl_tensor.shape
    H, L = params["w_out"].shape

    wi_e, wh_e, bi_e, bhn_e = fuse_gru_params(params["enc_gru"])
    wi_d, wh_d, bi_d, bhn_d = fuse_gru_params(params["dec_gru"])

    # --- encoder input path: time-major gather (no (B,S,E) activation
    # transpose) + hoisted fused input projection (cuDNN-style, batched over
    # the whole sequence as one (S*B, E) @ (E, 3H) matmul).
    nl_tm = nl_tensor.T                                        # (S, B) ids
    en_x = jnp.take(params["src_emb"], nl_tm, axis=0)          # (S, B, E)
    en_gi = (en_x.reshape(S * B, -1) @ wi_e + bi_e).reshape(S, B, -1)

    # --- decoder (teacher forcing) input path
    ilb = lb_tensor[:, :-1]                                    # (B, T)
    T = ilb.shape[1]
    lb_len = jnp.sum((ilb > 0).astype(jnp.int32), axis=1)      # (B,)
    de_x = jnp.take(params["lab_emb"], ilb.T, axis=0)          # (T, B, E)
    de_gi = (de_x.reshape(T * B, -1) @ wi_d + bi_d).reshape(T, B, -1)

    # --- lane-dense scoring weights: pad num_labels up to a multiple of 128
    Lp = ((L + 127) // 128) * 128
    w_out_p = jnp.zeros((H, Lp), jnp.float32).at[:, :L].set(params["w_out"])
    b_out_p = jnp.zeros((1, Lp), jnp.float32).at[:, :L].set(params["b_out"])

    nl_len_col = nl_len_tensor.astype(jnp.int32).reshape(B, 1)
    lb_len_col = lb_len.astype(jnp.int32).reshape(B, 1)

    scores_flat = encdec_pallas(en_gi, nl_len_col, de_gi, lb_len_col,
                                wh_e, bhn_e, wh_d, bhn_d, w_out_p, b_out_p)

    # (T*B, Lp) -> (T, B, Lp) -> (B, T, num_labels)
    de_score = jnp.transpose(scores_flat.reshape(T, B, Lp)[:, :, :L], (1, 0, 2))
    return de_score


# ----------------------------------------------------------------------------
if __name__ == "__main__":
    key = jax.random.PRNGKey(0)
    k_par, k_nl, k_lb = jax.random.split(key, 3)

    B = 2            # batch
    S = 8            # source (NL) sequence length
    Tp1 = 9          # label sequence length; decoder sees Tp1 - 1 = 8 steps
    E = 32           # embedding dim (semb_HPs[1] == enc_HPs[1])
    H = 32           # hidden dim (dec_HPs[1][2])
    SRC_VOCAB = 20
    NUM_LABELS = 10  # num_labels > 2 branch

    params = make_params(k_par, SRC_VOCAB, NUM_LABELS, E, H)

    # source tokens, padded with 0 past each length
    nl_len = jnp.array([8, 5], dtype=jnp.int32)
    nl_tensor = jax.random.randint(k_nl, (B, S), 1, SRC_VOCAB, dtype=jnp.int32)
    nl_tensor = jnp.where(jnp.arange(S)[None, :] < nl_len[:, None], nl_tensor, 0)

    # label tokens, padded with 0 past each length
    lb_len_full = jnp.array([9, 6], dtype=jnp.int32)
    lb_tensor = jax.random.randint(k_lb, (B, Tp1), 1, NUM_LABELS, dtype=jnp.int32)
    lb_tensor = jnp.where(jnp.arange(Tp1)[None, :] < lb_len_full[:, None], lb_tensor, 0)

    de_score = encdec_forward(params, nl_tensor, nl_len, lb_tensor)
    de_score = jax.block_until_ready(de_score)

    assert de_score.shape == (B, Tp1 - 1, NUM_LABELS)
    assert bool(jnp.all(jnp.isfinite(de_score)))
    print("KERNEL_OK")
</pallas_src>

<mosaic_0001>
module attributes {stable_mosaic.version = 11 : i64} {
  func.func @_encdec_kernel(%arg0: memref<8x2x96xf32, #tpu.memory_space<vmem>>, %arg1: memref<2x1xi32, #tpu.memory_space<vmem>>, %arg2: memref<8x2x96xf32, #tpu.memory_space<vmem>>, %arg3: memref<2x1xi32, #tpu.memory_space<vmem>>, %arg4: memref<32x96xf32, #tpu.memory_space<vmem>>, %arg5: memref<1x32xf32, #tpu.memory_space<vmem>>, %arg6: memref<32x96xf32, #tpu.memory_space<vmem>>, %arg7: memref<1x32xf32, #tpu.memory_space<vmem>>, %arg8: memref<32x128xf32, #tpu.memory_space<vmem>>, %arg9: memref<1x128xf32, #tpu.memory_space<vmem>>, %arg10: memref<16x128xf32, #tpu.memory_space<vmem>>, %arg11: memref<16x32xf32, #tpu.memory_space<vmem>>) attributes {dimension_semantics = [], scalar_prefetch = 0 : i64, scratch_operands = 1 : i64, tpu.core_type = #tpu.core_type<tc>} {
    %c0 = arith.constant 0 : index
    %c0_0 = arith.constant 0 : index
    %0 = vector.load %arg4[%c0, %c0_0] : memref<32x96xf32, #tpu.memory_space<vmem>>, vector<32x96xf32>
    %c0_1 = arith.constant 0 : index
    %c0_2 = arith.constant 0 : index
    %1 = vector.load %arg5[%c0_1, %c0_2] : memref<1x32xf32, #tpu.memory_space<vmem>>, vector<1x32xf32>
    %c0_3 = arith.constant 0 : index
    %c0_4 = arith.constant 0 : index
    %2 = vector.load %arg1[%c0_3, %c0_4] : memref<2x1xi32, #tpu.memory_space<vmem>>, vector<2x1xi32>
    %cst = arith.constant 0.000000e+00 : f32
    %3 = vector.broadcast %cst : f32 to vector<2x32xf32>
    %c0_i32 = arith.constant 0 : i32
    %4 = vector.broadcast %c0_i32 : i32 to vector<2x1xi32>
    %5 = arith.cmpi sgt, %2, %4 : vector<2x1xi32>
    %6 = arith.extui %5 : vector<2x1xi1> to vector<2x1xi32>
    %7 = arith.sitofp %6 : vector<2x1xi32> to vector<2x1xf32>
    %c0_5 = arith.constant 0 : index
    %c0_6 = arith.constant 0 : index
    %c0_7 = arith.constant 0 : index
    %8 = vector.load %arg0[%c0_5, %c0_6, %c0_7] : memref<8x2x96xf32, #tpu.memory_space<vmem>>, vector<1x2x96xf32>
    %9 = vector.shape_cast %8 : vector<1x2x96xf32> to vector<2x96xf32>
    %cst_8 = arith.constant dense<0.000000e+00> : vector<2x96xf32>
    %10 = tpu.matmul %3, %0, %cst_8 {dimension_numbers = #tpu.dot_dimension_numbers<[1], [0], [0], [1], [0, 0, 1, 1], [], []>} : vector<2x32xf32>, vector<32x96xf32>, vector<2x96xf32> -> vector<2x96xf32>
    %11 = vector.extract_strided_slice %9 {offsets = [0, 0], sizes = [2, 32], strides = [1, 1]} : vector<2x96xf32> to vector<2x32xf32>
    %12 = vector.extract_strided_slice %10 {offsets = [0, 0], sizes = [2, 32], strides = [1, 1]} : vector<2x96xf32> to vector<2x32xf32>
    %13 = arith.addf %11, %12 : vector<2x32xf32>
    %14 = arith.negf %13 : vector<2x32xf32>
    %15 = math.exp %14 : vector<2x32xf32>
    %cst_9 = arith.constant 1.000000e+00 : f32
    %16 = vector.broadcast %cst_9 : f32 to vector<2x32xf32>
    %17 = arith.addf %16, %15 : vector<2x32xf32>
    %18 = arith.divf %16, %17 : vector<2x32xf32>
    %19 = vector.extract_strided_slice %9 {offsets = [0, 32], sizes = [2, 32], strides = [1, 1]} : vector<2x96xf32> to vector<2x32xf32>
    %20 = vector.extract_strided_slice %10 {offsets = [0, 32], sizes = [2, 32], strides = [1, 1]} : vector<2x96xf32> to vector<2x32xf32>
    %21 = arith.addf %19, %20 : vector<2x32xf32>
    %22 = arith.negf %21 : vector<2x32xf32>
    %23 = math.exp %22 : vector<2x32xf32>
    %cst_10 = arith.constant 1.000000e+00 : f32
    %24 = vector.broadcast %cst_10 : f32 to vector<2x32xf32>
    %25 = arith.addf %24, %23 : vector<2x32xf32>
    %26 = arith.divf %24, %25 : vector<2x32xf32>
    %27 = vector.extract_strided_slice %9 {offsets = [0, 64], sizes = [2, 32], strides = [1, 1]} : vector<2x96xf32> to vector<2x32xf32>
    %28 = vector.extract_strided_slice %10 {offsets = [0, 64], sizes = [2, 32], strides = [1, 1]} : vector<2x96xf32> to vector<2x32xf32>
    %29 = vector.broadcast %1 : vector<1x32xf32> to vector<2x32xf32>
    %30 = arith.addf %28, %29 : vector<2x32xf32>
    %31 = arith.mulf %18, %30 : vector<2x32xf32>
    %32 = arith.addf %27, %31 : vector<2x32xf32>
    %33 = math.tanh %32 : vector<2x32xf32>
    %cst_11 = arith.constant 1.000000e+00 : f32
    %34 = vector.broadcast %cst_11 : f32 to vector<2x32xf32>
    %35 = arith.subf %34, %26 : vector<2x32xf32>
    %36 = arith.mulf %35, %33 : vector<2x32xf32>
    %37 = arith.mulf %26, %3 : vector<2x32xf32>
    %38 = arith.addf %36, %37 : vector<2x32xf32>
    %39 = vector.broadcast %7 : vector<2x1xf32> to vector<2x32xf32>
    %40 = arith.mulf %39, %38 : vector<2x32xf32>
    %cst_12 = arith.constant 1.000000e+00 : f32
    %41 = vector.broadcast %cst_12 : f32 to vector<2x1xf32>
    %42 = arith.subf %41, %7 : vector<2x1xf32>
    %43 = vector.broadcast %42 : vector<2x1xf32> to vector<2x32xf32>
    %44 = arith.mulf %43, %3 : vector<2x32xf32>
    %45 = arith.addf %40, %44 : vector<2x32xf32>
    %c1_i32 = arith.constant 1 : i32
    %46 = vector.broadcast %c1_i32 : i32 to vector<2x1xi32>
    %47 = arith.cmpi sgt, %2, %46 : vector<2x1xi32>
    %48 = arith.extui %47 : vector<2x1xi1> to vector<2x1xi32>
    %49 = arith.sitofp %48 : vector<2x1xi32> to vector<2x1xf32>
    %c1 = arith.constant 1 : index
    %c0_13 = arith.constant 0 : index
    %c0_14 = arith.constant 0 : index
    %50 = vector.load %arg0[%c1, %c0_13, %c0_14] : memref<8x2x96xf32, #tpu.memory_space<vmem>>, vector<1x2x96xf32>
    %51 = vector.shape_cast %50 : vector<1x2x96xf32> to vector<2x96xf32>
    %cst_15 = arith.constant dense<0.000000e+00> : vector<2x96xf32>
    %52 = tpu.matmul %45, %0, %cst_15 {dimension_numbers = #tpu.dot_dimension_numbers<[1], [0], [0], [1], [0, 0, 1, 1], [], []>} : vector<2x32xf32>, vector<32x96xf32>, vector<2x96xf32> -> vector<2x96xf32>
    %53 = vector.extract_strided_slice %51 {offsets = [0, 0], sizes = [2, 32], strides = [1, 1]} : vector<2x96xf32> to vector<2x32xf32>
    %54 = vector.extract_strided_slice %52 {offsets = [0, 0], sizes = [2, 32], strides = [1, 1]} : vector<2x96xf32> to vector<2x32xf32>
    %55 = arith.addf %53, %54 : vector<2x32xf32>
    %56 = arith.negf %55 : vector<2x32xf32>
    %57 = math.exp %56 : vector<2x32xf32>
    %cst_16 = arith.constant 1.000000e+00 : f32
    %58 = vector.broadcast %cst_16 : f32 to vector<2x32xf32>
    %59 = arith.addf %58, %57 : vector<2x32xf32>
    %60 = arith.divf %58, %59 : vector<2x32xf32>
    %61 = vector.extract_strided_slice %51 {offsets = [0, 32], sizes = [2, 32], strides = [1, 1]} : vector<2x96xf32> to vector<2x32xf32>
    %62 = vector.extract_strided_slice %52 {offsets = [0, 32], sizes = [2, 32], strides = [1, 1]} : vector<2x96xf32> to vector<2x32xf32>
    %63 = arith.addf %61, %62 : vector<2x32xf32>
    %64 = arith.negf %63 : vector<2x32xf32>
    %65 = math.exp %64 : vector<2x32xf32>
    %cst_17 = arith.constant 1.000000e+00 : f32
    %66 = vector.broadcast %cst_17 : f32 to vector<2x32xf32>
    %67 = arith.addf %66, %65 : vector<2x32xf32>
    %68 = arith.divf %66, %67 : vector<2x32xf32>
    %69 = vector.extract_strided_slice %51 {offsets = [0, 64], sizes = [2, 32], strides = [1, 1]} : vector<2x96xf32> to vector<2x32xf32>
    %70 = vector.extract_strided_slice %52 {offsets = [0, 64], sizes = [2, 32], strides = [1, 1]} : vector<2x96xf32> to vector<2x32xf32>
    %71 = vector.broadcast %1 : vector<1x32xf32> to vector<2x32xf32>
    %72 = arith.addf %70, %71 : vector<2x32xf32>
    %73 = arith.mulf %60, %72 : vector<2x32xf32>
    %74 = arith.addf %69, %73 : vector<2x32xf32>
    %75 = math.tanh %74 : vector<2x32xf32>
    %cst_18 = arith.constant 1.000000e+00 : f32
    %76 = vector.broadcast %cst_18 : f32 to vector<2x32xf32>
    %77 = arith.subf %76, %68 : vector<2x32xf32>
    %78 = arith.mulf %77, %75 : vector<2x32xf32>
    %79 = arith.mulf %68, %45 : vector<2x32xf32>
    %80 = arith.addf %78, %79 : vector<2x32xf32>
    %81 = vector.broadcast %49 : vector<2x1xf32> to vector<2x32xf32>
    %82 = arith.mulf %81, %80 : vector<2x32xf32>
    %cst_19 = arith.constant 1.000000e+00 : f32
    %83 = vector.broadcast %cst_19 : f32 to vector<2x1xf32>
    %84 = arith.subf %83, %49 : vector<2x1xf32>
    %85 = vector.broadcast %84 : vector<2x1xf32> to vector<2x32xf32>
    %86 = arith.mulf %85, %45 : vector<2x32xf32>
    %87 = arith.addf %82, %86 : vector<2x32xf32>
    %c2_i32 = arith.constant 2 : i32
    %88 = vector.broadcast %c2_i32 : i32 to vector<2x1xi32>
    %89 = arith.cmpi sgt, %2, %88 : vector<2x1xi32>
    %90 = arith.extui %89 : vector<2x1xi1> to vector<2x1xi32>
    %91 = arith.sitofp %90 : vector<2x1xi32> to vector<2x1xf32>
    %c2 = arith.constant 2 : index
    %c0_20 = arith.constant 0 : index
    %c0_21 = arith.constant 0 : index
    %92 = vector.load %arg0[%c2, %c0_20, %c0_21] : memref<8x2x96xf32, #tpu.memory_space<vmem>>, vector<1x2x96xf32>
    %93 = vector.shape_cast %92 : vector<1x2x96xf32> to vector<2x96xf32>
    %cst_22 = arith.constant dense<0.000000e+00> : vector<2x96xf32>
    %94 = tpu.matmul %87, %0, %cst_22 {dimension_numbers = #tpu.dot_dimension_numbers<[1], [0], [0], [1], [0, 0, 1, 1], [], []>} : vector<2x32xf32>, vector<32x96xf32>, vector<2x96xf32> -> vector<2x96xf32>
    %95 = vector.extract_strided_slice %93 {offsets = [0, 0], sizes = [2, 32], strides = [1, 1]} : vector<2x96xf32> to vector<2x32xf32>
    %96 = vector.extract_strided_slice %94 {offsets = [0, 0], sizes = [2, 32], strides = [1, 1]} : vector<2x96xf32> to vector<2x32xf32>
    %97 = arith.addf %95, %96 : vector<2x32xf32>
    %98 = arith.negf %97 : vector<2x32xf32>
    %99 = math.exp %98 : vector<2x32xf32>
    %cst_23 = arith.constant 1.000000e+00 : f32
    %100 = vector.broadcast %cst_23 : f32 to vector<2x32xf32>
    %101 = arith.addf %100, %99 : vector<2x32xf32>
    %102 = arith.divf %100, %101 : vector<2x32xf32>
    %103 = vector.extract_strided_slice %93 {offsets = [0, 32], sizes = [2, 32], strides = [1, 1]} : vector<2x96xf32> to vector<2x32xf32>
    %104 = vector.extract_strided_slice %94 {offsets = [0, 32], sizes = [2, 32], strides = [1, 1]} : vector<2x96xf32> to vector<2x32xf32>
    %105 = arith.addf %103, %104 : vector<2x32xf32>
    %106 = arith.negf %105 : vector<2x32xf32>
    %107 = math.exp %106 : vector<2x32xf32>
    %cst_24 = arith.constant 1.000000e+00 : f32
    %108 = vector.broadcast %cst_24 : f32 to vector<2x32xf32>
    %109 = arith.addf %108, %107 : vector<2x32xf32>
    %110 = arith.divf %108, %109 : vector<2x32xf32>
    %111 = vector.extract_strided_slice %93 {offsets = [0, 64], sizes = [2, 32], strides = [1, 1]} : vector<2x96xf32> to vector<2x32xf32>
    %112 = vector.extract_strided_slice %94 {offsets = [0, 64], sizes = [2, 32], strides = [1, 1]} : vector<2x96xf32> to vector<2x32xf32>
    %113 = vector.broadcast %1 : vector<1x32xf32> to vector<2x32xf32>
    %114 = arith.addf %112, %113 : vector<2x32xf32>
    %115 = arith.mulf %102, %114 : vector<2x32xf32>
    %116 = arith.addf %111, %115 : vector<2x32xf32>
    %117 = math.tanh %116 : vector<2x32xf32>
    %cst_25 = arith.constant 1.000000e+00 : f32
    %118 = vector.broadcast %cst_25 : f32 to vector<2x32xf32>
    %119 = arith.subf %118, %110 : vector<2x32xf32>
    %120 = arith.mulf %119, %117 : vector<2x32xf32>
    %121 = arith.mulf %110, %87 : vector<2x32xf32>
    %122 = arith.addf %120, %121 : vector<2x32xf32>
    %123 = vector.broadcast %91 : vector<2x1xf32> to vector<2x32xf32>
    %124 = arith.mulf %123, %122 : vector<2x32xf32>
    %cst_26 = arith.constant 1.000000e+00 : f32
    %125 = vector.broadcast %cst_26 : f32 to vector<2x1xf32>
    %126 = arith.subf %125, %91 : vector<2x1xf32>
    %127 = vector.broadcast %126 : vector<2x1xf32> to vector<2x32xf32>
    %128 = arith.mulf %127, %87 : vector<2x32xf32>
    %129 = arith.addf %124, %128 : vector<2x32xf32>
    %c3_i32 = arith.constant 3 : i32
    %130 = vector.broadcast %c3_i32 : i32 to vector<2x1xi32>
    %131 = arith.cmpi sgt, %2, %130 : vector<2x1xi32>
    %132 = arith.extui %131 : vector<2x1xi1> to vector<2x1xi32>
    %133 = arith.sitofp %132 : vector<2x1xi32> to vector<2x1xf32>
    %c3 = arith.constant 3 : index
    %c0_27 = arith.constant 0 : index
    %c0_28 = arith.constant 0 : index
    %134 = vector.load %arg0[%c3, %c0_27, %c0_28] : memref<8x2x96xf32, #tpu.memory_space<vmem>>, vector<1x2x96xf32>
    %135 = vector.shape_cast %134 : vector<1x2x96xf32> to vector<2x96xf32>
    %cst_29 = arith.constant dense<0.000000e+00> : vector<2x96xf32>
    %136 = tpu.matmul %129, %0, %cst_29 {dimension_numbers = #tpu.dot_dimension_numbers<[1], [0], [0], [1], [0, 0, 1, 1], [], []>} : vector<2x32xf32>, vector<32x96xf32>, vector<2x96xf32> -> vector<2x96xf32>
    %137 = vector.extract_strided_slice %135 {offsets = [0, 0], sizes = [2, 32], strides = [1, 1]} : vector<2x96xf32> to vector<2x32xf32>
    %138 = vector.extract_strided_slice %136 {offsets = [0, 0], sizes = [2, 32], strides = [1, 1]} : vector<2x96xf32> to vector<2x32xf32>
    %139 = arith.addf %137, %138 : vector<2x32xf32>
    %140 = arith.negf %139 : vector<2x32xf32>
    %141 = math.exp %140 : vector<2x32xf32>
    %cst_30 = arith.constant 1.000000e+00 : f32
    %142 = vector.broadcast %cst_30 : f32 to vector<2x32xf32>
    %143 = arith.addf %142, %141 : vector<2x32xf32>
    %144 = arith.divf %142, %143 : vector<2x32xf32>
    %145 = vector.extract_strided_slice %135 {offsets = [0, 32], sizes = [2, 32], strides = [1, 1]} : vector<2x96xf32> to vector<2x32xf32>
    %146 = vector.extract_strided_slice %136 {offsets = [0, 32], sizes = [2, 32], strides = [1, 1]} : vector<2x96xf32> to vector<2x32xf32>
    %147 = arith.addf %145, %146 : vector<2x32xf32>
    %148 = arith.negf %147 : vector<2x32xf32>
    %149 = math.exp %148 : vector<2x32xf32>
    %cst_31 = arith.constant 1.000000e+00 : f32
    %150 = vector.broadcast %cst_31 : f32 to vector<2x32xf32>
    %151 = arith.addf %150, %149 : vector<2x32xf32>
    %152 = arith.divf %150, %151 : vector<2x32xf32>
    %153 = vector.extract_strided_slice %135 {offsets = [0, 64], sizes = [2, 32], strides = [1, 1]} : vector<2x96xf32> to vector<2x32xf32>
    %154 = vector.extract_strided_slice %136 {offsets = [0, 64], sizes = [2, 32], strides = [1, 1]} : vector<2x96xf32> to vector<2x32xf32>
    %155 = vector.broadcast %1 : vector<1x32xf32> to vector<2x32xf32>
    %156 = arith.addf %154, %155 : vector<2x32xf32>
    %157 = arith.mulf %144, %156 : vector<2x32xf32>
    %158 = arith.addf %153, %157 : vector<2x32xf32>
    %159 = math.tanh %158 : vector<2x32xf32>
    %cst_32 = arith.constant 1.000000e+00 : f32
    %160 = vector.broadcast %cst_32 : f32 to vector<2x32xf32>
    %161 = arith.subf %160, %152 : vector<2x32xf32>
    %162 = arith.mulf %161, %159 : vector<2x32xf32>
    %163 = arith.mulf %152, %129 : vector<2x32xf32>
    %164 = arith.addf %162, %163 : vector<2x32xf32>
    %165 = vector.broadcast %133 : vector<2x1xf32> to vector<2x32xf32>
    %166 = arith.mulf %165, %164 : vector<2x32xf32>
    %cst_33 = arith.constant 1.000000e+00 : f32
    %167 = vector.broadcast %cst_33 : f32 to vector<2x1xf32>
    %168 = arith.subf %167, %133 : vector<2x1xf32>
    %169 = vector.broadcast %168 : vector<2x1xf32> to vector<2x32xf32>
    %170 = arith.mulf %169, %129 : vector<2x32xf32>
    %171 = arith.addf %166, %170 : vector<2x32xf32>
    %c4_i32 = arith.constant 4 : i32
    %172 = vector.broadcast %c4_i32 : i32 to vector<2x1xi32>
    %173 = arith.cmpi sgt, %2, %172 : vector<2x1xi32>
    %174 = arith.extui %173 : vector<2x1xi1> to vector<2x1xi32>
    %175 = arith.sitofp %174 : vector<2x1xi32> to vector<2x1xf32>
    %c4 = arith.constant 4 : index
    %c0_34 = arith.constant 0 : index
    %c0_35 = arith.constant 0 : index
    %176 = vector.load %arg0[%c4, %c0_34, %c0_35] : memref<8x2x96xf32, #tpu.memory_space<vmem>>, vector<1x2x96xf32>
    %177 = vector.shape_cast %176 : vector<1x2x96xf32> to vector<2x96xf32>
    %cst_36 = arith.constant dense<0.000000e+00> : vector<2x96xf32>
    %178 = tpu.matmul %171, %0, %cst_36 {dimension_numbers = #tpu.dot_dimension_numbers<[1], [0], [0], [1], [0, 0, 1, 1], [], []>} : vector<2x32xf32>, vector<32x96xf32>, vector<2x96xf32> -> vector<2x96xf32>
    %179 = vector.extract_strided_slice %177 {offsets = [0, 0], sizes = [2, 32], strides = [1, 1]} : vector<2x96xf32> to vector<2x32xf32>
    %180 = vector.extract_strided_slice %178 {offsets = [0, 0], sizes = [2, 32], strides = [1, 1]} : vector<2x96xf32> to vector<2x32xf32>
    %181 = arith.addf %179, %180 : vector<2x32xf32>
    %182 = arith.negf %181 : vector<2x32xf32>
    %183 = math.exp %182 : vector<2x32xf32>
    %cst_37 = arith.constant 1.000000e+00 : f32
    %184 = vector.broadcast %cst_37 : f32 to vector<2x32xf32>
    %185 = arith.addf %184, %183 : vector<2x32xf32>
    %186 = arith.divf %184, %185 : vector<2x32xf32>
    %187 = vector.extract_strided_slice %177 {offsets = [0, 32], sizes = [2, 32], strides = [1, 1]} : vector<2x96xf32> to vector<2x32xf32>
    %188 = vector.extract_strided_slice %178 {offsets = [0, 32], sizes = [2, 32], strides = [1, 1]} : vector<2x96xf32> to vector<2x32xf32>
    %189 = arith.addf %187, %188 : vector<2x32xf32>
    %190 = arith.negf %189 : vector<2x32xf32>
    %191 = math.exp %190 : vector<2x32xf32>
    %cst_38 = arith.constant 1.000000e+00 : f32
    %192 = vector.broadcast %cst_38 : f32 to vector<2x32xf32>
    %193 = arith.addf %192, %191 : vector<2x32xf32>
    %194 = arith.divf %192, %193 : vector<2x32xf32>
    %195 = vector.extract_strided_slice %177 {offsets = [0, 64], sizes = [2, 32], strides = [1, 1]} : vector<2x96xf32> to vector<2x32xf32>
    %196 = vector.extract_strided_slice %178 {offsets = [0, 64], sizes = [2, 32], strides = [1, 1]} : vector<2x96xf32> to vector<2x32xf32>
    %197 = vector.broadcast %1 : vector<1x32xf32> to vector<2x32xf32>
    %198 = arith.addf %196, %197 : vector<2x32xf32>
    %199 = arith.mulf %186, %198 : vector<2x32xf32>
    %200 = arith.addf %195, %199 : vector<2x32xf32>
    %201 = math.tanh %200 : vector<2x32xf32>
    %cst_39 = arith.constant 1.000000e+00 : f32
    %202 = vector.broadcast %cst_39 : f32 to vector<2x32xf32>
    %203 = arith.subf %202, %194 : vector<2x32xf32>
    %204 = arith.mulf %203, %201 : vector<2x32xf32>
    %205 = arith.mulf %194, %171 : vector<2x32xf32>
    %206 = arith.addf %204, %205 : vector<2x32xf32>
    %207 = vector.broadcast %175 : vector<2x1xf32> to vector<2x32xf32>
    %208 = arith.mulf %207, %206 : vector<2x32xf32>
    %cst_40 = arith.constant 1.000000e+00 : f32
    %209 = vector.broadcast %cst_40 : f32 to vector<2x1xf32>
    %210 = arith.subf %209, %175 : vector<2x1xf32>
    %211 = vector.broadcast %210 : vector<2x1xf32> to vector<2x32xf32>
    %212 = arith.mulf %211, %171 : vector<2x32xf32>
    %213 = arith.addf %208, %212 : vector<2x32xf32>
    %c5_i32 = arith.constant 5 : i32
    %214 = vector.broadcast %c5_i32 : i32 to vector<2x1xi32>
    %215 = arith.cmpi sgt, %2, %214 : vector<2x1xi32>
    %216 = arith.extui %215 : vector<2x1xi1> to vector<2x1xi32>
    %217 = arith.sitofp %216 : vector<2x1xi32> to vector<2x1xf32>
    %c5 = arith.constant 5 : index
    %c0_41 = arith.constant 0 : index
    %c0_42 = arith.constant 0 : index
    %218 = vector.load %arg0[%c5, %c0_41, %c0_42] : memref<8x2x96xf32, #tpu.memory_space<vmem>>, vector<1x2x96xf32>
    %219 = vector.shape_cast %218 : vector<1x2x96xf32> to vector<2x96xf32>
    %cst_43 = arith.constant dense<0.000000e+00> : vector<2x96xf32>
    %220 = tpu.matmul %213, %0, %cst_43 {dimension_numbers = #tpu.dot_dimension_numbers<[1], [0], [0], [1], [0, 0, 1, 1], [], []>} : vector<2x32xf32>, vector<32x96xf32>, vector<2x96xf32> -> vector<2x96xf32>
    %221 = vector.extract_strided_slice %219 {offsets = [0, 0], sizes = [2, 32], strides = [1, 1]} : vector<2x96xf32> to vector<2x32xf32>
    %222 = vector.extract_strided_slice %220 {offsets = [0, 0], sizes = [2, 32], strides = [1, 1]} : vector<2x96xf32> to vector<2x32xf32>
    %223 = arith.addf %221, %222 : vector<2x32xf32>
    %224 = arith.negf %223 : vector<2x32xf32>
    %225 = math.exp %224 : vector<2x32xf32>
    %cst_44 = arith.constant 1.000000e+00 : f32
    %226 = vector.broadcast %cst_44 : f32 to vector<2x32xf32>
    %227 = arith.addf %226, %225 : vector<2x32xf32>
    %228 = arith.divf %226, %227 : vector<2x32xf32>
    %229 = vector.extract_strided_slice %219 {offsets = [0, 32], sizes = [2, 32], strides = [1, 1]} : vector<2x96xf32> to vector<2x32xf32>
    %230 = vector.extract_strided_slice %220 {offsets = [0, 32], sizes = [2, 32], strides = [1, 1]} : vector<2x96xf32> to vector<2x32xf32>
    %231 = arith.addf %229, %230 : vector<2x32xf32>
    %232 = arith.negf %231 : vector<2x32xf32>
    %233 = math.exp %232 : vector<2x32xf32>
    %cst_45 = arith.constant 1.000000e+00 : f32
    %234 = vector.broadcast %cst_45 : f32 to vector<2x32xf32>
    %235 = arith.addf %234, %233 : vector<2x32xf32>
    %236 = arith.divf %234, %235 : vector<2x32xf32>
    %237 = vector.extract_strided_slice %219 {offsets = [0, 64], sizes = [2, 32], strides = [1, 1]} : vector<2x96xf32> to vector<2x32xf32>
    %238 = vector.extract_strided_slice %220 {offsets = [0, 64], sizes = [2, 32], strides = [1, 1]} : vector<2x96xf32> to vector<2x32xf32>
    %239 = vector.broadcast %1 : vector<1x32xf32> to vector<2x32xf32>
    %240 = arith.addf %238, %239 : vector<2x32xf32>
    %241 = arith.mulf %228, %240 : vector<2x32xf32>
    %242 = arith.addf %237, %241 : vector<2x32xf32>
    %243 = math.tanh %242 : vector<2x32xf32>
    %cst_46 = arith.constant 1.000000e+00 : f32
    %244 = vector.broadcast %cst_46 : f32 to vector<2x32xf32>
    %245 = arith.subf %244, %236 : vector<2x32xf32>
    %246 = arith.mulf %245, %243 : vector<2x32xf32>
    %247 = arith.mulf %236, %213 : vector<2x32xf32>
    %248 = arith.addf %246, %247 : vector<2x32xf32>
    %249 = vector.broadcast %217 : vector<2x1xf32> to vector<2x32xf32>
    %250 = arith.mulf %249, %248 : vector<2x32xf32>
    %cst_47 = arith.constant 1.000000e+00 : f32
    %251 = vector.broadcast %cst_47 : f32 to vector<2x1xf32>
    %252 = arith.subf %251, %217 : vector<2x1xf32>
    %253 = vector.broadcast %252 : vector<2x1xf32> to vector<2x32xf32>
    %254 = arith.mulf %253, %213 : vector<2x32xf32>
    %255 = arith.addf %250, %254 : vector<2x32xf32>
    %c6_i32 = arith.constant 6 : i32
    %256 = vector.broadcast %c6_i32 : i32 to vector<2x1xi32>
    %257 = arith.cmpi sgt, %2, %256 : vector<2x1xi32>
    %258 = arith.extui %257 : vector<2x1xi1> to vector<2x1xi32>
    %259 = arith.sitofp %258 : vector<2x1xi32> to vector<2x1xf32>
    %c6 = arith.constant 6 : index
    %c0_48 = arith.constant 0 : index
    %c0_49 = arith.constant 0 : index
    %260 = vector.load %arg0[%c6, %c0_48, %c0_49] : memref<8x2x96xf32, #tpu.memory_space<vmem>>, vector<1x2x96xf32>
    %261 = vector.shape_cast %260 : vector<1x2x96xf32> to vector<2x96xf32>
    %cst_50 = arith.constant dense<0.000000e+00> : vector<2x96xf32>
    %262 = tpu.matmul %255, %0, %cst_50 {dimension_numbers = #tpu.dot_dimension_numbers<[1], [0], [0], [1], [0, 0, 1, 1], [], []>} : vector<2x32xf32>, vector<32x96xf32>, vector<2x96xf32> -> vector<2x96xf32>
    %263 = vector.extract_strided_slice %261 {offsets = [0, 0], sizes = [2, 32], strides = [1, 1]} : vector<2x96xf32> to vector<2x32xf32>
    %264 = vector.extract_strided_slice %262 {offsets = [0, 0], sizes = [2, 32], strides = [1, 1]} : vector<2x96xf32> to vector<2x32xf32>
    %265 = arith.addf %263, %264 : vector<2x32xf32>
    %266 = arith.negf %265 : vector<2x32xf32>
    %267 = math.exp %266 : vector<2x32xf32>
    %cst_51 = arith.constant 1.000000e+00 : f32
    %268 = vector.broadcast %cst_51 : f32 to vector<2x32xf32>
    %269 = arith.addf %268, %267 : vector<2x32xf32>
    %270 = arith.divf %268, %269 : vector<2x32xf32>
    %271 = vector.extract_strided_slice %261 {offsets = [0, 32], sizes = [2, 32], strides = [1, 1]} : vector<2x96xf32> to vector<2x32xf32>
    %272 = vector.extract_strided_slice %262 {offsets = [0, 32], sizes = [2, 32], strides = [1, 1]} : vector<2x96xf32> to vector<2x32xf32>
    %273 = arith.addf %271, %272 : vector<2x32xf32>
    %274 = arith.negf %273 : vector<2x32xf32>
    %275 = math.exp %274 : vector<2x32xf32>
    %cst_52 = arith.constant 1.000000e+00 : f32
    %276 = vector.broadcast %cst_52 : f32 to vector<2x32xf32>
    %277 = arith.addf %276, %275 : vector<2x32xf32>
    %278 = arith.divf %276, %277 : vector<2x32xf32>
    %279 = vector.extract_strided_slice %261 {offsets = [0, 64], sizes = [2, 32], strides = [1, 1]} : vector<2x96xf32> to vector<2x32xf32>
    %280 = vector.extract_strided_slice %262 {offsets = [0, 64], sizes = [2, 32], strides = [1, 1]} : vector<2x96xf32> to vector<2x32xf32>
    %281 = vector.broadcast %1 : vector<1x32xf32> to vector<2x32xf32>
    %282 = arith.addf %280, %281 : vector<2x32xf32>
    %283 = arith.mulf %270, %282 : vector<2x32xf32>
    %284 = arith.addf %279, %283 : vector<2x32xf32>
    %285 = math.tanh %284 : vector<2x32xf32>
    %cst_53 = arith.constant 1.000000e+00 : f32
    %286 = vector.broadcast %cst_53 : f32 to vector<2x32xf32>
    %287 = arith.subf %286, %278 : vector<2x32xf32>
    %288 = arith.mulf %287, %285 : vector<2x32xf32>
    %289 = arith.mulf %278, %255 : vector<2x32xf32>
    %290 = arith.addf %288, %289 : vector<2x32xf32>
    %291 = vector.broadcast %259 : vector<2x1xf32> to vector<2x32xf32>
    %292 = arith.mulf %291, %290 : vector<2x32xf32>
    %cst_54 = arith.constant 1.000000e+00 : f32
    %293 = vector.broadcast %cst_54 : f32 to vector<2x1xf32>
    %294 = arith.subf %293, %259 : vector<2x1xf32>
    %295 = vector.broadcast %294 : vector<2x1xf32> to vector<2x32xf32>
    %296 = arith.mulf %295, %255 : vector<2x32xf32>
    %297 = arith.addf %292, %296 : vector<2x32xf32>
    %c7_i32 = arith.constant 7 : i32
    %298 = vector.broadcast %c7_i32 : i32 to vector<2x1xi32>
    %299 = arith.cmpi sgt, %2, %298 : vector<2x1xi32>
    %300 = arith.extui %299 : vector<2x1xi1> to vector<2x1xi32>
    %301 = arith.sitofp %300 : vector<2x1xi32> to vector<2x1xf32>
    %c7 = arith.constant 7 : index
    %c0_55 = arith.constant 0 : index
    %c0_56 = arith.constant 0 : index
    %302 = vector.load %arg0[%c7, %c0_55, %c0_56] : memref<8x2x96xf32, #tpu.memory_space<vmem>>, vector<1x2x96xf32>
    %303 = vector.shape_cast %302 : vector<1x2x96xf32> to vector<2x96xf32>
    %cst_57 = arith.constant dense<0.000000e+00> : vector<2x96xf32>
    %304 = tpu.matmul %297, %0, %cst_57 {dimension_numbers = #tpu.dot_dimension_numbers<[1], [0], [0], [1], [0, 0, 1, 1], [], []>} : vector<2x32xf32>, vector<32x96xf32>, vector<2x96xf32> -> vector<2x96xf32>
    %305 = vector.extract_strided_slice %303 {offsets = [0, 0], sizes = [2, 32], strides = [1, 1]} : vector<2x96xf32> to vector<2x32xf32>
    %306 = vector.extract_strided_slice %304 {offsets = [0, 0], sizes = [2, 32], strides = [1, 1]} : vector<2x96xf32> to vector<2x32xf32>
    %307 = arith.addf %305, %306 : vector<2x32xf32>
    %308 = arith.negf %307 : vector<2x32xf32>
    %309 = math.exp %308 : vector<2x32xf32>
    %cst_58 = arith.constant 1.000000e+00 : f32
    %310 = vector.broadcast %cst_58 : f32 to vector<2x32xf32>
    %311 = arith.addf %310, %309 : vector<2x32xf32>
    %312 = arith.divf %310, %311 : vector<2x32xf32>
    %313 = vector.extract_strided_slice %303 {offsets = [0, 32], sizes = [2, 32], strides = [1, 1]} : vector<2x96xf32> to vector<2x32xf32>
    %314 = vector.extract_strided_slice %304 {offsets = [0, 32], sizes = [2, 32], strides = [1, 1]} : vector<2x96xf32> to vector<2x32xf32>
    %315 = arith.addf %313, %314 : vector<2x32xf32>
    %316 = arith.negf %315 : vector<2x32xf32>
    %317 = math.exp %316 : vector<2x32xf32>
    %cst_59 = arith.constant 1.000000e+00 : f32
    %318 = vector.broadcast %cst_59 : f32 to vector<2x32xf32>
    %319 = arith.addf %318, %317 : vector<2x32xf32>
    %320 = arith.divf %318, %319 : vector<2x32xf32>
    %321 = vector.extract_strided_slice %303 {offsets = [0, 64], sizes = [2, 32], strides = [1, 1]} : vector<2x96xf32> to vector<2x32xf32>
    %322 = vector.extract_strided_slice %304 {offsets = [0, 64], sizes = [2, 32], strides = [1, 1]} : vector<2x96xf32> to vector<2x32xf32>
    %323 = vector.broadcast %1 : vector<1x32xf32> to vector<2x32xf32>
    %324 = arith.addf %322, %323 : vector<2x32xf32>
    %325 = arith.mulf %312, %324 : vector<2x32xf32>
    %326 = arith.addf %321, %325 : vector<2x32xf32>
    %327 = math.tanh %326 : vector<2x32xf32>
    %cst_60 = arith.constant 1.000000e+00 : f32
    %328 = vector.broadcast %cst_60 : f32 to vector<2x32xf32>
    %329 = arith.subf %328, %320 : vector<2x32xf32>
    %330 = arith.mulf %329, %327 : vector<2x32xf32>
    %331 = arith.mulf %320, %297 : vector<2x32xf32>
    %332 = arith.addf %330, %331 : vector<2x32xf32>
    %333 = vector.broadcast %301 : vector<2x1xf32> to vector<2x32xf32>
    %334 = arith.mulf %333, %332 : vector<2x32xf32>
    %cst_61 = arith.constant 1.000000e+00 : f32
    %335 = vector.broadcast %cst_61 : f32 to vector<2x1xf32>
    %336 = arith.subf %335, %301 : vector<2x1xf32>
    %337 = vector.broadcast %336 : vector<2x1xf32> to vector<2x32xf32>
    %338 = arith.mulf %337, %297 : vector<2x32xf32>
    %339 = arith.addf %334, %338 : vector<2x32xf32>
    %c0_62 = arith.constant 0 : index
    %c0_63 = arith.constant 0 : index
    %340 = vector.load %arg6[%c0_62, %c0_63] : memref<32x96xf32, #tpu.memory_space<vmem>>, vector<32x96xf32>
    %c0_64 = arith.constant 0 : index
    %c0_65 = arith.constant 0 : index
    %341 = vector.load %arg7[%c0_64, %c0_65] : memref<1x32xf32, #tpu.memory_space<vmem>>, vector<1x32xf32>
    %c0_66 = arith.constant 0 : index
    %c0_67 = arith.constant 0 : index
    %342 = vector.load %arg3[%c0_66, %c0_67] : memref<2x1xi32, #tpu.memory_space<vmem>>, vector<2x1xi32>
    %c0_i32_68 = arith.constant 0 : i32
    %343 = vector.broadcast %c0_i32_68 : i32 to vector<2x1xi32>
    %344 = arith.cmpi sgt, %342, %343 : vector<2x1xi32>
    %345 = arith.extui %344 : vector<2x1xi1> to vector<2x1xi32>
    %346 = arith.sitofp %345 : vector<2x1xi32> to vector<2x1xf32>
    %c0_69 = arith.constant 0 : index
    %c0_70 = arith.constant 0 : index
    %c0_71 = arith.constant 0 : index
    %347 = vector.load %arg2[%c0_69, %c0_70, %c0_71] : memref<8x2x96xf32, #tpu.memory_space<vmem>>, vector<1x2x96xf32>
    %348 = vector.shape_cast %347 : vector<1x2x96xf32> to vector<2x96xf32>
    %cst_72 = arith.constant dense<0.000000e+00> : vector<2x96xf32>
    %349 = tpu.matmul %339, %340, %cst_72 {dimension_numbers = #tpu.dot_dimension_numbers<[1], [0], [0], [1], [0, 0, 1, 1], [], []>} : vector<2x32xf32>, vector<32x96xf32>, vector<2x96xf32> -> vector<2x96xf32>
    %350 = vector.extract_strided_slice %348 {offsets = [0, 0], sizes = [2, 32], strides = [1, 1]} : vector<2x96xf32> to vector<2x32xf32>
    %351 = vector.extract_strided_slice %349 {offsets = [0, 0], sizes = [2, 32], strides = [1, 1]} : vector<2x96xf32> to vector<2x32xf32>
    %352 = arith.addf %350, %351 : vector<2x32xf32>
    %353 = arith.negf %352 : vector<2x32xf32>
    %354 = math.exp %353 : vector<2x32xf32>
    %cst_73 = arith.constant 1.000000e+00 : f32
    %355 = vector.broadcast %cst_73 : f32 to vector<2x32xf32>
    %356 = arith.addf %355, %354 : vector<2x32xf32>
    %357 = arith.divf %355, %356 : vector<2x32xf32>
    %358 = vector.extract_strided_slice %348 {offsets = [0, 32], sizes = [2, 32], strides = [1, 1]} : vector<2x96xf32> to vector<2x32xf32>
    %359 = vector.extract_strided_slice %349 {offsets = [0, 32], sizes = [2, 32], strides = [1, 1]} : vector<2x96xf32> to vector<2x32xf32>
    %360 = arith.addf %358, %359 : vector<2x32xf32>
    %361 = arith.negf %360 : vector<2x32xf32>
    %362 = math.exp %361 : vector<2x32xf32>
    %cst_74 = arith.constant 1.000000e+00 : f32
    %363 = vector.broadcast %cst_74 : f32 to vector<2x32xf32>
    %364 = arith.addf %363, %362 : vector<2x32xf32>
    %365 = arith.divf %363, %364 : vector<2x32xf32>
    %366 = vector.extract_strided_slice %348 {offsets = [0, 64], sizes = [2, 32], strides = [1, 1]} : vector<2x96xf32> to vector<2x32xf32>
    %367 = vector.extract_strided_slice %349 {offsets = [0, 64], sizes = [2, 32], strides = [1, 1]} : vector<2x96xf32> to vector<2x32xf32>
    %368 = vector.broadcast %341 : vector<1x32xf32> to vector<2x32xf32>
    %369 = arith.addf %367, %368 : vector<2x32xf32>
    %370 = arith.mulf %357, %369 : vector<2x32xf32>
    %371 = arith.addf %366, %370 : vector<2x32xf32>
    %372 = math.tanh %371 : vector<2x32xf32>
    %cst_75 = arith.constant 1.000000e+00 : f32
    %373 = vector.broadcast %cst_75 : f32 to vector<2x32xf32>
    %374 = arith.subf %373, %365 : vector<2x32xf32>
    %375 = arith.mulf %374, %372 : vector<2x32xf32>
    %376 = arith.mulf %365, %339 : vector<2x32xf32>
    %377 = arith.addf %375, %376 : vector<2x32xf32>
    %378 = vector.broadcast %346 : vector<2x1xf32> to vector<2x32xf32>
    %379 = arith.mulf %378, %377 : vector<2x32xf32>
    %cst_76 = arith.constant 1.000000e+00 : f32
    %380 = vector.broadcast %cst_76 : f32 to vector<2x1xf32>
    %381 = arith.subf %380, %346 : vector<2x1xf32>
    %382 = vector.broadcast %381 : vector<2x1xf32> to vector<2x32xf32>
    %383 = arith.mulf %382, %339 : vector<2x32xf32>
    %384 = arith.addf %379, %383 : vector<2x32xf32>
    %385 = vector.broadcast %346 : vector<2x1xf32> to vector<2x32xf32>
    %386 = arith.mulf %385, %377 : vector<2x32xf32>
    %c0_77 = arith.constant 0 : index
    %c0_78 = arith.constant 0 : index
    %387 = vector.load %arg11[%c0_77, %c0_78] : memref<16x32xf32, #tpu.memory_space<vmem>>, vector<2x32xf32>
    tpu.vector_store %arg11[%c0_77, %c0_78], %386 {strides = array<i32>} : memref<16x32xf32, #tpu.memory_space<vmem>>, vector<2x32xf32>,
    %c1_i32_79 = arith.constant 1 : i32
    %388 = vector.broadcast %c1_i32_79 : i32 to vector<2x1xi32>
    %389 = arith.cmpi sgt, %342, %388 : vector<2x1xi32>
    %390 = arith.extui %389 : vector<2x1xi1> to vector<2x1xi32>
    %391 = arith.sitofp %390 : vector<2x1xi32> to vector<2x1xf32>
    %c1_80 = arith.constant 1 : index
    %c0_81 = arith.constant 0 : index
    %c0_82 = arith.constant 0 : index
    %392 = vector.load %arg2[%c1_80, %c0_81, %c0_82] : memref<8x2x96xf32, #tpu.memory_space<vmem>>, vector<1x2x96xf32>
    %393 = vector.shape_cast %392 : vector<1x2x96xf32> to vector<2x96xf32>
    %cst_83 = arith.constant dense<0.000000e+00> : vector<2x96xf32>
    %394 = tpu.matmul %384, %340, %cst_83 {dimension_numbers = #tpu.dot_dimension_numbers<[1], [0], [0], [1], [0, 0, 1, 1], [], []>} : vector<2x32xf32>, vector<32x96xf32>, vector<2x96xf32> -> vector<2x96xf32>
    %395 = vector.extract_strided_slice %393 {offsets = [0, 0], sizes = [2, 32], strides = [1, 1]} : vector<2x96xf32> to vector<2x32xf32>
    %396 = vector.extract_strided_slice %394 {offsets = [0, 0], sizes = [2, 32], strides = [1, 1]} : vector<2x96xf32> to vector<2x32xf32>
    %397 = arith.addf %395, %396 : vector<2x32xf32>
    %398 = arith.negf %397 : vector<2x32xf32>
    %399 = math.exp %398 : vector<2x32xf32>
    %cst_84 = arith.constant 1.000000e+00 : f32
    %400 = vector.broadcast %cst_84 : f32 to vector<2x32xf32>
    %401 = arith.addf %400, %399 : vector<2x32xf32>
    %402 = arith.divf %400, %401 : vector<2x32xf32>
    %403 = vector.extract_strided_slice %393 {offsets = [0, 32], sizes = [2, 32], strides = [1, 1]} : vector<2x96xf32> to vector<2x32xf32>
    %404 = vector.extract_strided_slice %394 {offsets = [0, 32], sizes = [2, 32], strides = [1, 1]} : vector<2x96xf32> to vector<2x32xf32>
    %405 = arith.addf %403, %404 : vector<2x32xf32>
    %406 = arith.negf %405 : vector<2x32xf32>
    %407 = math.exp %406 : vector<2x32xf32>
    %cst_85 = arith.constant 1.000000e+00 : f32
    %408 = vector.broadcast %cst_85 : f32 to vector<2x32xf32>
    %409 = arith.addf %408, %407 : vector<2x32xf32>
    %410 = arith.divf %408, %409 : vector<2x32xf32>
    %411 = vector.extract_strided_slice %393 {offsets = [0, 64], sizes = [2, 32], strides = [1, 1]} : vector<2x96xf32> to vector<2x32xf32>
    %412 = vector.extract_strided_slice %394 {offsets = [0, 64], sizes = [2, 32], strides = [1, 1]} : vector<2x96xf32> to vector<2x32xf32>
    %413 = vector.broadcast %341 : vector<1x32xf32> to vector<2x32xf32>
    %414 = arith.addf %412, %413 : vector<2x32xf32>
    %415 = arith.mulf %402, %414 : vector<2x32xf32>
    %416 = arith.addf %411, %415 : vector<2x32xf32>
    %417 = math.tanh %416 : vector<2x32xf32>
    %cst_86 = arith.constant 1.000000e+00 : f32
    %418 = vector.broadcast %cst_86 : f32 to vector<2x32xf32>
    %419 = arith.subf %418, %410 : vector<2x32xf32>
    %420 = arith.mulf %419, %417 : vector<2x32xf32>
    %421 = arith.mulf %410, %384 : vector<2x32xf32>
    %422 = arith.addf %420, %421 : vector<2x32xf32>
    %423 = vector.broadcast %391 : vector<2x1xf32> to vector<2x32xf32>
    %424 = arith.mulf %423, %422 : vector<2x32xf32>
    %cst_87 = arith.constant 1.000000e+00 : f32
    %425 = vector.broadcast %cst_87 : f32 to vector<2x1xf32>
    %426 = arith.subf %425, %391 : vector<2x1xf32>
    %427 = vector.broadcast %426 : vector<2x1xf32> to vector<2x32xf32>
    %428 = arith.mulf %427, %384 : vector<2x32xf32>
    %429 = arith.addf %424, %428 : vector<2x32xf32>
    %430 = vector.broadcast %391 : vector<2x1xf32> to vector<2x32xf32>
    %431 = arith.mulf %430, %422 : vector<2x32xf32>
    %c2_88 = arith.constant 2 : index
    %c0_89 = arith.constant 0 : index
    %432 = vector.load %arg11[%c2_88, %c0_89] : memref<16x32xf32, #tpu.memory_space<vmem>>, vector<2x32xf32>
    tpu.vector_store %arg11[%c2_88, %c0_89], %431 {strides = array<i32>} : memref<16x32xf32, #tpu.memory_space<vmem>>, vector<2x32xf32>,
    %c2_i32_90 = arith.constant 2 : i32
    %433 = vector.broadcast %c2_i32_90 : i32 to vector<2x1xi32>
    %434 = arith.cmpi sgt, %342, %433 : vector<2x1xi32>
    %435 = arith.extui %434 : vector<2x1xi1> to vector<2x1xi32>
    %436 = arith.sitofp %435 : vector<2x1xi32> to vector<2x1xf32>
    %c2_91 = arith.constant 2 : index
    %c0_92 = arith.constant 0 : index
    %c0_93 = arith.constant 0 : index
    %437 = vector.load %arg2[%c2_91, %c0_92, %c0_93] : memref<8x2x96xf32, #tpu.memory_space<vmem>>, vector<1x2x96xf32>
    %438 = vector.shape_cast %437 : vector<1x2x96xf32> to vector<2x96xf32>
    %cst_94 = arith.constant dense<0.000000e+00> : vector<2x96xf32>
    %439 = tpu.matmul %429, %340, %cst_94 {dimension_numbers = #tpu.dot_dimension_numbers<[1], [0], [0], [1], [0, 0, 1, 1], [], []>} : vector<2x32xf32>, vector<32x96xf32>, vector<2x96xf32> -> vector<2x96xf32>
    %440 = vector.extract_strided_slice %438 {offsets = [0, 0], sizes = [2, 32], strides = [1, 1]} : vector<2x96xf32> to vector<2x32xf32>
    %441 = vector.extract_strided_slice %439 {offsets = [0, 0], sizes = [2, 32], strides = [1, 1]} : vector<2x96xf32> to vector<2x32xf32>
    %442 = arith.addf %440, %441 : vector<2x32xf32>
    %443 = arith.negf %442 : vector<2x32xf32>
    %444 = math.exp %443 : vector<2x32xf32>
    %cst_95 = arith.constant 1.000000e+00 : f32
    %445 = vector.broadcast %cst_95 : f32 to vector<2x32xf32>
    %446 = arith.addf %445, %444 : vector<2x32xf32>
    %447 = arith.divf %445, %446 : vector<2x32xf32>
    %448 = vector.extract_strided_slice %438 {offsets = [0, 32], sizes = [2, 32], strides = [1, 1]} : vector<2x96xf32> to vector<2x32xf32>
    %449 = vector.extract_strided_slice %439 {offsets = [0, 32], sizes = [2, 32], strides = [1, 1]} : vector<2x96xf32> to vector<2x32xf32>
    %450 = arith.addf %448, %449 : vector<2x32xf32>
    %451 = arith.negf %450 : vector<2x32xf32>
    %452 = math.exp %451 : vector<2x32xf32>
    %cst_96 = arith.constant 1.000000e+00 : f32
    %453 = vector.broadcast %cst_96 : f32 to vector<2x32xf32>
    %454 = arith.addf %453, %452 : vector<2x32xf32>
    %455 = arith.divf %453, %454 : vector<2x32xf32>
    %456 = vector.extract_strided_slice %438 {offsets = [0, 64], sizes = [2, 32], strides = [1, 1]} : vector<2x96xf32> to vector<2x32xf32>
    %457 = vector.extract_strided_slice %439 {offsets = [0, 64], sizes = [2, 32], strides = [1, 1]} : vector<2x96xf32> to vector<2x32xf32>
    %458 = vector.broadcast %341 : vector<1x32xf32> to vector<2x32xf32>
    %459 = arith.addf %457, %458 : vector<2x32xf32>
    %460 = arith.mulf %447, %459 : vector<2x32xf32>
    %461 = arith.addf %456, %460 : vector<2x32xf32>
    %462 = math.tanh %461 : vector<2x32xf32>
    %cst_97 = arith.constant 1.000000e+00 : f32
    %463 = vector.broadcast %cst_97 : f32 to vector<2x32xf32>
    %464 = arith.subf %463, %455 : vector<2x32xf32>
    %465 = arith.mulf %464, %462 : vector<2x32xf32>
    %466 = arith.mulf %455, %429 : vector<2x32xf32>
    %467 = arith.addf %465, %466 : vector<2x32xf32>
    %468 = vector.broadcast %436 : vector<2x1xf32> to vector<2x32xf32>
    %469 = arith.mulf %468, %467 : vector<2x32xf32>
    %cst_98 = arith.constant 1.000000e+00 : f32
    %470 = vector.broadcast %cst_98 : f32 to vector<2x1xf32>
    %471 = arith.subf %470, %436 : vector<2x1xf32>
    %472 = vector.broadcast %471 : vector<2x1xf32> to vector<2x32xf32>
    %473 = arith.mulf %472, %429 : vector<2x32xf32>
    %474 = arith.addf %469, %473 : vector<2x32xf32>
    %475 = vector.broadcast %436 : vector<2x1xf32> to vector<2x32xf32>
    %476 = arith.mulf %475, %467 : vector<2x32xf32>
    %c4_99 = arith.constant 4 : index
    %c0_100 = arith.constant 0 : index
    %477 = vector.load %arg11[%c4_99, %c0_100] : memref<16x32xf32, #tpu.memory_space<vmem>>, vector<2x32xf32>
    tpu.vector_store %arg11[%c4_99, %c0_100], %476 {strides = array<i32>} : memref<16x32xf32, #tpu.memory_space<vmem>>, vector<2x32xf32>,
    %c3_i32_101 = arith.constant 3 : i32
    %478 = vector.broadcast %c3_i32_101 : i32 to vector<2x1xi32>
    %479 = arith.cmpi sgt, %342, %478 : vector<2x1xi32>
    %480 = arith.extui %479 : vector<2x1xi1> to vector<2x1xi32>
    %481 = arith.sitofp %480 : vector<2x1xi32> to vector<2x1xf32>
    %c3_102 = arith.constant 3 : index
    %c0_103 = arith.constant 0 : index
    %c0_104 = arith.constant 0 : index
    %482 = vector.load %arg2[%c3_102, %c0_103, %c0_104] : memref<8x2x96xf32, #tpu.memory_space<vmem>>, vector<1x2x96xf32>
    %483 = vector.shape_cast %482 : vector<1x2x96xf32> to vector<2x96xf32>
    %cst_105 = arith.constant dense<0.000000e+00> : vector<2x96xf32>
    %484 = tpu.matmul %474, %340, %cst_105 {dimension_numbers = #tpu.dot_dimension_numbers<[1], [0], [0], [1], [0, 0, 1, 1], [], []>} : vector<2x32xf32>, vector<32x96xf32>, vector<2x96xf32> -> vector<2x96xf32>
    %485 = vector.extract_strided_slice %483 {offsets = [0, 0], sizes = [2, 32], strides = [1, 1]} : vector<2x96xf32> to vector<2x32xf32>
    %486 = vector.extract_strided_slice %484 {offsets = [0, 0], sizes = [2, 32], strides = [1, 1]} : vector<2x96xf32> to vector<2x32xf32>
    %487 = arith.addf %485, %486 : vector<2x32xf32>
    %488 = arith.negf %487 : vector<2x32xf32>
    %489 = math.exp %488 : vector<2x32xf32>
    %cst_106 = arith.constant 1.000000e+00 : f32
    %490 = vector.broadcast %cst_106 : f32 to vector<2x32xf32>
    %491 = arith.addf %490, %489 : vector<2x32xf32>
    %492 = arith.divf %490, %491 : vector<2x32xf32>
    %493 = vector.extract_strided_slice %483 {offsets = [0, 32], sizes = [2, 32], strides = [1, 1]} : vector<2x96xf32> to vector<2x32xf32>
    %494 = vector.extract_strided_slice %484 {offsets = [0, 32], sizes = [2, 32], strides = [1, 1]} : vector<2x96xf32> to vector<2x32xf32>
    %495 = arith.addf %493, %494 : vector<2x32xf32>
    %496 = arith.negf %495 : vector<2x32xf32>
    %497 = math.exp %496 : vector<2x32xf32>
    %cst_107 = arith.constant 1.000000e+00 : f32
    %498 = vector.broadcast %cst_107 : f32 to vector<2x32xf32>
    %499 = arith.addf %498, %497 : vector<2x32xf32>
    %500 = arith.divf %498, %499 : vector<2x32xf32>
    %501 = vector.extract_strided_slice %483 {offsets = [0, 64], sizes = [2, 32], strides = [1, 1]} : vector<2x96xf32> to vector<2x32xf32>
    %502 = vector.extract_strided_slice %484 {offsets = [0, 64], sizes = [2, 32], strides = [1, 1]} : vector<2x96xf32> to vector<2x32xf32>
    %503 = vector.broadcast %341 : vector<1x32xf32> to vector<2x32xf32>
    %504 = arith.addf %502, %503 : vector<2x32xf32>
    %505 = arith.mulf %492, %504 : vector<2x32xf32>
    %506 = arith.addf %501, %505 : vector<2x32xf32>
    %507 = math.tanh %506 : vector<2x32xf32>
    %cst_108 = arith.constant 1.000000e+00 : f32
    %508 = vector.broadcast %cst_108 : f32 to vector<2x32xf32>
    %509 = arith.subf %508, %500 : vector<2x32xf32>
    %510 = arith.mulf %509, %507 : vector<2x32xf32>
    %511 = arith.mulf %500, %474 : vector<2x32xf32>
    %512 = arith.addf %510, %511 : vector<2x32xf32>
    %513 = vector.broadcast %481 : vector<2x1xf32> to vector<2x32xf32>
    %514 = arith.mulf %513, %512 : vector<2x32xf32>
    %cst_109 = arith.constant 1.000000e+00 : f32
    %515 = vector.broadcast %cst_109 : f32 to vector<2x1xf32>
    %516 = arith.subf %515, %481 : vector<2x1xf32>
    %517 = vector.broadcast %516 : vector<2x1xf32> to vector<2x32xf32>
    %518 = arith.mulf %517, %474 : vector<2x32xf32>
    %519 = arith.addf %514, %518 : vector<2x32xf32>
    %520 = vector.broadcast %481 : vector<2x1xf32> to vector<2x32xf32>
    %521 = arith.mulf %520, %512 : vector<2x32xf32>
    %c6_110 = arith.constant 6 : index
    %c0_111 = arith.constant 0 : index
    %522 = vector.load %arg11[%c6_110, %c0_111] : memref<16x32xf32, #tpu.memory_space<vmem>>, vector<2x32xf32>
    tpu.vector_store %arg11[%c6_110, %c0_111], %521 {strides = array<i32>} : memref<16x32xf32, #tpu.memory_space<vmem>>, vector<2x32xf32>,
    %c4_i32_112 = arith.constant 4 : i32
    %523 = vector.broadcast %c4_i32_112 : i32 to vector<2x1xi32>
    %524 = arith.cmpi sgt, %342, %523 : vector<2x1xi32>
    %525 = arith.extui %524 : vector<2x1xi1> to vector<2x1xi32>
    %526 = arith.sitofp %525 : vector<2x1xi32> to vector<2x1xf32>
    %c4_113 = arith.constant 4 : index
    %c0_114 = arith.constant 0 : index
    %c0_115 = arith.constant 0 : index
    %527 = vector.load %arg2[%c4_113, %c0_114, %c0_115] : memref<8x2x96xf32, #tpu.memory_space<vmem>>, vector<1x2x96xf32>
    %528 = vector.shape_cast %527 : vector<1x2x96xf32> to vector<2x96xf32>
    %cst_116 = arith.constant dense<0.000000e+00> : vector<2x96xf32>
    %529 = tpu.matmul %519, %340, %cst_116 {dimension_numbers = #tpu.dot_dimension_numbers<[1], [0], [0], [1], [0, 0, 1, 1], [], []>} : vector<2x32xf32>, vector<32x96xf32>, vector<2x96xf32> -> vector<2x96xf32>
    %530 = vector.extract_strided_slice %528 {offsets = [0, 0], sizes = [2, 32], strides = [1, 1]} : vector<2x96xf32> to vector<2x32xf32>
    %531 = vector.extract_strided_slice %529 {offsets = [0, 0], sizes = [2, 32], strides = [1, 1]} : vector<2x96xf32> to vector<2x32xf32>
    %532 = arith.addf %530, %531 : vector<2x32xf32>
    %533 = arith.negf %532 : vector<2x32xf32>
    %534 = math.exp %533 : vector<2x32xf32>
    %cst_117 = arith.constant 1.000000e+00 : f32
    %535 = vector.broadcast %cst_117 : f32 to vector<2x32xf32>
    %536 = arith.addf %535, %534 : vector<2x32xf32>
    %537 = arith.divf %535, %536 : vector<2x32xf32>
    %538 = vector.extract_strided_slice %528 {offsets = [0, 32], sizes = [2, 32], strides = [1, 1]} : vector<2x96xf32> to vector<2x32xf32>
    %539 = vector.extract_strided_slice %529 {offsets = [0, 32], sizes = [2, 32], strides = [1, 1]} : vector<2x96xf32> to vector<2x32xf32>
    %540 = arith.addf %538, %539 : vector<2x32xf32>
    %541 = arith.negf %540 : vector<2x32xf32>
    %542 = math.exp %541 : vector<2x32xf32>
    %cst_118 = arith.constant 1.000000e+00 : f32
    %543 = vector.broadcast %cst_118 : f32 to vector<2x32xf32>
    %544 = arith.addf %543, %542 : vector<2x32xf32>
    %545 = arith.divf %543, %544 : vector<2x32xf32>
    %546 = vector.extract_strided_slice %528 {offsets = [0, 64], sizes = [2, 32], strides = [1, 1]} : vector<2x96xf32> to vector<2x32xf32>
    %547 = vector.extract_strided_slice %529 {offsets = [0, 64], sizes = [2, 32], strides = [1, 1]} : vector<2x96xf32> to vector<2x32xf32>
    %548 = vector.broadcast %341 : vector<1x32xf32> to vector<2x32xf32>
    %549 = arith.addf %547, %548 : vector<2x32xf32>
    %550 = arith.mulf %537, %549 : vector<2x32xf32>
    %551 = arith.addf %546, %550 : vector<2x32xf32>
    %552 = math.tanh %551 : vector<2x32xf32>
    %cst_119 = arith.constant 1.000000e+00 : f32
    %553 = vector.broadcast %cst_119 : f32 to vector<2x32xf32>
    %554 = arith.subf %553, %545 : vector<2x32xf32>
    %555 = arith.mulf %554, %552 : vector<2x32xf32>
    %556 = arith.mulf %545, %519 : vector<2x32xf32>
    %557 = arith.addf %555, %556 : vector<2x32xf32>
    %558 = vector.broadcast %526 : vector<2x1xf32> to vector<2x32xf32>
    %559 = arith.mulf %558, %557 : vector<2x32xf32>
    %cst_120 = arith.constant 1.000000e+00 : f32
    %560 = vector.broadcast %cst_120 : f32 to vector<2x1xf32>
    %561 = arith.subf %560, %526 : vector<2x1xf32>
    %562 = vector.broadcast %561 : vector<2x1xf32> to vector<2x32xf32>
    %563 = arith.mulf %562, %519 : vector<2x32xf32>
    %564 = arith.addf %559, %563 : vector<2x32xf32>
    %565 = vector.broadcast %526 : vector<2x1xf32> to vector<2x32xf32>
    %566 = arith.mulf %565, %557 : vector<2x32xf32>
    %c8 = arith.constant 8 : index
    %c0_121 = arith.constant 0 : index
    %567 = vector.load %arg11[%c8, %c0_121] : memref<16x32xf32, #tpu.memory_space<vmem>>, vector<2x32xf32>
    tpu.vector_store %arg11[%c8, %c0_121], %566 {strides = array<i32>} : memref<16x32xf32, #tpu.memory_space<vmem>>, vector<2x32xf32>,
    %c5_i32_122 = arith.constant 5 : i32
    %568 = vector.broadcast %c5_i32_122 : i32 to vector<2x1xi32>
    %569 = arith.cmpi sgt, %342, %568 : vector<2x1xi32>
    %570 = arith.extui %569 : vector<2x1xi1> to vector<2x1xi32>
    %571 = arith.sitofp %570 : vector<2x1xi32> to vector<2x1xf32>
    %c5_123 = arith.constant 5 : index
    %c0_124 = arith.constant 0 : index
    %c0_125 = arith.constant 0 : index
    %572 = vector.load %arg2[%c5_123, %c0_124, %c0_125] : memref<8x2x96xf32, #tpu.memory_space<vmem>>, vector<1x2x96xf32>
    %573 = vector.shape_cast %572 : vector<1x2x96xf32> to vector<2x96xf32>
    %cst_126 = arith.constant dense<0.000000e+00> : vector<2x96xf32>
    %574 = tpu.matmul %564, %340, %cst_126 {dimension_numbers = #tpu.dot_dimension_numbers<[1], [0], [0], [1], [0, 0, 1, 1], [], []>} : vector<2x32xf32>, vector<32x96xf32>, vector<2x96xf32> -> vector<2x96xf32>
    %575 = vector.extract_strided_slice %573 {offsets = [0, 0], sizes = [2, 32], strides = [1, 1]} : vector<2x96xf32> to vector<2x32xf32>
    %576 = vector.extract_strided_slice %574 {offsets = [0, 0], sizes = [2, 32], strides = [1, 1]} : vector<2x96xf32> to vector<2x32xf32>
    %577 = arith.addf %575, %576 : vector<2x32xf32>
    %578 = arith.negf %577 : vector<2x32xf32>
    %579 = math.exp %578 : vector<2x32xf32>
    %cst_127 = arith.constant 1.000000e+00 : f32
    %580 = vector.broadcast %cst_127 : f32 to vector<2x32xf32>
    %581 = arith.addf %580, %579 : vector<2x32xf32>
    %582 = arith.divf %580, %581 : vector<2x32xf32>
    %583 = vector.extract_strided_slice %573 {offsets = [0, 32], sizes = [2, 32], strides = [1, 1]} : vector<2x96xf32> to vector<2x32xf32>
    %584 = vector.extract_strided_slice %574 {offsets = [0, 32], sizes = [2, 32], strides = [1, 1]} : vector<2x96xf32> to vector<2x32xf32>
    %585 = arith.addf %583, %584 : vector<2x32xf32>
    %586 = arith.negf %585 : vector<2x32xf32>
    %587 = math.exp %586 : vector<2x32xf32>
    %cst_128 = arith.constant 1.000000e+00 : f32
    %588 = vector.broadcast %cst_128 : f32 to vector<2x32xf32>
    %589 = arith.addf %588, %587 : vector<2x32xf32>
    %590 = arith.divf %588, %589 : vector<2x32xf32>
    %591 = vector.extract_strided_slice %573 {offsets = [0, 64], sizes = [2, 32], strides = [1, 1]} : vector<2x96xf32> to vector<2x32xf32>
    %592 = vector.extract_strided_slice %574 {offsets = [0, 64], sizes = [2, 32], strides = [1, 1]} : vector<2x96xf32> to vector<2x32xf32>
    %593 = vector.broadcast %341 : vector<1x32xf32> to vector<2x32xf32>
    %594 = arith.addf %592, %593 : vector<2x32xf32>
    %595 = arith.mulf %582, %594 : vector<2x32xf32>
    %596 = arith.addf %591, %595 : vector<2x32xf32>
    %597 = math.tanh %596 : vector<2x32xf32>
    %cst_129 = arith.constant 1.000000e+00 : f32
    %598 = vector.broadcast %cst_129 : f32 to vector<2x32xf32>
    %599 = arith.subf %598, %590 : vector<2x32xf32>
    %600 = arith.mulf %599, %597 : vector<2x32xf32>
    %601 = arith.mulf %590, %564 : vector<2x32xf32>
    %602 = arith.addf %600, %601 : vector<2x32xf32>
    %603 = vector.broadcast %571 : vector<2x1xf32> to vector<2x32xf32>
    %604 = arith.mulf %603, %602 : vector<2x32xf32>
    %cst_130 = arith.constant 1.000000e+00 : f32
    %605 = vector.broadcast %cst_130 : f32 to vector<2x1xf32>
    %606 = arith.subf %605, %571 : vector<2x1xf32>
    %607 = vector.broadcast %606 : vector<2x1xf32> to vector<2x32xf32>
    %608 = arith.mulf %607, %564 : vector<2x32xf32>
    %609 = arith.addf %604, %608 : vector<2x32xf32>
    %610 = vector.broadcast %571 : vector<2x1xf32> to vector<2x32xf32>
    %611 = arith.mulf %610, %602 : vector<2x32xf32>
    %c10 = arith.constant 10 : index
    %c0_131 = arith.constant 0 : index
    %612 = vector.load %arg11[%c10, %c0_131] : memref<16x32xf32, #tpu.memory_space<vmem>>, vector<2x32xf32>
    tpu.vector_store %arg11[%c10, %c0_131], %611 {strides = array<i32>} : memref<16x32xf32, #tpu.memory_space<vmem>>, vector<2x32xf32>,
    %c6_i32_132 = arith.constant 6 : i32
    %613 = vector.broadcast %c6_i32_132 : i32 to vector<2x1xi32>
    %614 = arith.cmpi sgt, %342, %613 : vector<2x1xi32>
    %615 = arith.extui %614 : vector<2x1xi1> to vector<2x1xi32>
    %616 = arith.sitofp %615 : vector<2x1xi32> to vector<2x1xf32>
    %c6_133 = arith.constant 6 : index
    %c0_134 = arith.constant 0 : index
    %c0_135 = arith.constant 0 : index
    %617 = vector.load %arg2[%c6_133, %c0_134, %c0_135] : memref<8x2x96xf32, #tpu.memory_space<vmem>>, vector<1x2x96xf32>
    %618 = vector.shape_cast %617 : vector<1x2x96xf32> to vector<2x96xf32>
    %cst_136 = arith.constant dense<0.000000e+00> : vector<2x96xf32>
    %619 = tpu.matmul %609, %340, %cst_136 {dimension_numbers = #tpu.dot_dimension_numbers<[1], [0], [0], [1], [0, 0, 1, 1], [], []>} : vector<2x32xf32>, vector<32x96xf32>, vector<2x96xf32> -> vector<2x96xf32>
    %620 = vector.extract_strided_slice %618 {offsets = [0, 0], sizes = [2, 32], strides = [1, 1]} : vector<2x96xf32> to vector<2x32xf32>
    %621 = vector.extract_strided_slice %619 {offsets = [0, 0], sizes = [2, 32], strides = [1, 1]} : vector<2x96xf32> to vector<2x32xf32>
    %622 = arith.addf %620, %621 : vector<2x32xf32>
    %623 = arith.negf %622 : vector<2x32xf32>
    %624 = math.exp %623 : vector<2x32xf32>
    %cst_137 = arith.constant 1.000000e+00 : f32
    %625 = vector.broadcast %cst_137 : f32 to vector<2x32xf32>
    %626 = arith.addf %625, %624 : vector<2x32xf32>
    %627 = arith.divf %625, %626 : vector<2x32xf32>
    %628 = vector.extract_strided_slice %618 {offsets = [0, 32], sizes = [2, 32], strides = [1, 1]} : vector<2x96xf32> to vector<2x32xf32>
    %629 = vector.extract_strided_slice %619 {offsets = [0, 32], sizes = [2, 32], strides = [1, 1]} : vector<2x96xf32> to vector<2x32xf32>
    %630 = arith.addf %628, %629 : vector<2x32xf32>
    %631 = arith.negf %630 : vector<2x32xf32>
    %632 = math.exp %631 : vector<2x32xf32>
    %cst_138 = arith.constant 1.000000e+00 : f32
    %633 = vector.broadcast %cst_138 : f32 to vector<2x32xf32>
    %634 = arith.addf %633, %632 : vector<2x32xf32>
    %635 = arith.divf %633, %634 : vector<2x32xf32>
    %636 = vector.extract_strided_slice %618 {offsets = [0, 64], sizes = [2, 32], strides = [1, 1]} : vector<2x96xf32> to vector<2x32xf32>
    %637 = vector.extract_strided_slice %619 {offsets = [0, 64], sizes = [2, 32], strides = [1, 1]} : vector<2x96xf32> to vector<2x32xf32>
    %638 = vector.broadcast %341 : vector<1x32xf32> to vector<2x32xf32>
    %639 = arith.addf %637, %638 : vector<2x32xf32>
    %640 = arith.mulf %627, %639 : vector<2x32xf32>
    %641 = arith.addf %636, %640 : vector<2x32xf32>
    %642 = math.tanh %641 : vector<2x32xf32>
    %cst_139 = arith.constant 1.000000e+00 : f32
    %643 = vector.broadcast %cst_139 : f32 to vector<2x32xf32>
    %644 = arith.subf %643, %635 : vector<2x32xf32>
    %645 = arith.mulf %644, %642 : vector<2x32xf32>
    %646 = arith.mulf %635, %609 : vector<2x32xf32>
    %647 = arith.addf %645, %646 : vector<2x32xf32>
    %648 = vector.broadcast %616 : vector<2x1xf32> to vector<2x32xf32>
    %649 = arith.mulf %648, %647 : vector<2x32xf32>
    %cst_140 = arith.constant 1.000000e+00 : f32
    %650 = vector.broadcast %cst_140 : f32 to vector<2x1xf32>
    %651 = arith.subf %650, %616 : vector<2x1xf32>
    %652 = vector.broadcast %651 : vector<2x1xf32> to vector<2x32xf32>
    %653 = arith.mulf %652, %609 : vector<2x32xf32>
    %654 = arith.addf %649, %653 : vector<2x32xf32>
    %655 = vector.broadcast %616 : vector<2x1xf32> to vector<2x32xf32>
    %656 = arith.mulf %655, %647 : vector<2x32xf32>
    %c12 = arith.constant 12 : index
    %c0_141 = arith.constant 0 : index
    %657 = vector.load %arg11[%c12, %c0_141] : memref<16x32xf32, #tpu.memory_space<vmem>>, vector<2x32xf32>
    tpu.vector_store %arg11[%c12, %c0_141], %656 {strides = array<i32>} : memref<16x32xf32, #tpu.memory_space<vmem>>, vector<2x32xf32>,
    %c7_i32_142 = arith.constant 7 : i32
    %658 = vector.broadcast %c7_i32_142 : i32 to vector<2x1xi32>
    %659 = arith.cmpi sgt, %342, %658 : vector<2x1xi32>
    %660 = arith.extui %659 : vector<2x1xi1> to vector<2x1xi32>
    %661 = arith.sitofp %660 : vector<2x1xi32> to vector<2x1xf32>
    %c7_143 = arith.constant 7 : index
    %c0_144 = arith.constant 0 : index
    %c0_145 = arith.constant 0 : index
    %662 = vector.load %arg2[%c7_143, %c0_144, %c0_145] : memref<8x2x96xf32, #tpu.memory_space<vmem>>, vector<1x2x96xf32>
    %663 = vector.shape_cast %662 : vector<1x2x96xf32> to vector<2x96xf32>
    %cst_146 = arith.constant dense<0.000000e+00> : vector<2x96xf32>
    %664 = tpu.matmul %654, %340, %cst_146 {dimension_numbers = #tpu.dot_dimension_numbers<[1], [0], [0], [1], [0, 0, 1, 1], [], []>} : vector<2x32xf32>, vector<32x96xf32>, vector<2x96xf32> -> vector<2x96xf32>
    %665 = vector.extract_strided_slice %663 {offsets = [0, 0], sizes = [2, 32], strides = [1, 1]} : vector<2x96xf32> to vector<2x32xf32>
    %666 = vector.extract_strided_slice %664 {offsets = [0, 0], sizes = [2, 32], strides = [1, 1]} : vector<2x96xf32> to vector<2x32xf32>
    %667 = arith.addf %665, %666 : vector<2x32xf32>
    %668 = arith.negf %667 : vector<2x32xf32>
    %669 = math.exp %668 : vector<2x32xf32>
    %cst_147 = arith.constant 1.000000e+00 : f32
    %670 = vector.broadcast %cst_147 : f32 to vector<2x32xf32>
    %671 = arith.addf %670, %669 : vector<2x32xf32>
    %672 = arith.divf %670, %671 : vector<2x32xf32>
    %673 = vector.extract_strided_slice %663 {offsets = [0, 32], sizes = [2, 32], strides = [1, 1]} : vector<2x96xf32> to vector<2x32xf32>
    %674 = vector.extract_strided_slice %664 {offsets = [0, 32], sizes = [2, 32], strides = [1, 1]} : vector<2x96xf32> to vector<2x32xf32>
    %675 = arith.addf %673, %674 : vector<2x32xf32>
    %676 = arith.negf %675 : vector<2x32xf32>
    %677 = math.exp %676 : vector<2x32xf32>
    %cst_148 = arith.constant 1.000000e+00 : f32
    %678 = vector.broadcast %cst_148 : f32 to vector<2x32xf32>
    %679 = arith.addf %678, %677 : vector<2x32xf32>
    %680 = arith.divf %678, %679 : vector<2x32xf32>
    %681 = vector.extract_strided_slice %663 {offsets = [0, 64], sizes = [2, 32], strides = [1, 1]} : vector<2x96xf32> to vector<2x32xf32>
    %682 = vector.extract_strided_slice %664 {offsets = [0, 64], sizes = [2, 32], strides = [1, 1]} : vector<2x96xf32> to vector<2x32xf32>
    %683 = vector.broadcast %341 : vector<1x32xf32> to vector<2x32xf32>
    %684 = arith.addf %682, %683 : vector<2x32xf32>
    %685 = arith.mulf %672, %684 : vector<2x32xf32>
    %686 = arith.addf %681, %685 : vector<2x32xf32>
    %687 = math.tanh %686 : vector<2x32xf32>
    %cst_149 = arith.constant 1.000000e+00 : f32
    %688 = vector.broadcast %cst_149 : f32 to vector<2x32xf32>
    %689 = arith.subf %688, %680 : vector<2x32xf32>
    %690 = arith.mulf %689, %687 : vector<2x32xf32>
    %691 = arith.mulf %680, %654 : vector<2x32xf32>
    %692 = arith.addf %690, %691 : vector<2x32xf32>
    %693 = vector.broadcast %661 : vector<2x1xf32> to vector<2x32xf32>
    %694 = arith.mulf %693, %692 : vector<2x32xf32>
    %c14 = arith.constant 14 : index
    %c0_150 = arith.constant 0 : index
    %695 = vector.load %arg11[%c14, %c0_150] : memref<16x32xf32, #tpu.memory_space<vmem>>, vector<2x32xf32>
    tpu.vector_store %arg11[%c14, %c0_150], %694 {strides = array<i32>} : memref<16x32xf32, #tpu.memory_space<vmem>>, vector<2x32xf32>,
    %c0_151 = arith.constant 0 : index
    %c0_152 = arith.constant 0 : index
    %696 = vector.load %arg11[%c0_151, %c0_152] : memref<16x32xf32, #tpu.memory_space<vmem>>, vector<16x32xf32>
    %c0_153 = arith.constant 0 : index
    %c0_154 = arith.constant 0 : index
    %697 = vector.load %arg8[%c0_153, %c0_154] : memref<32x128xf32, #tpu.memory_space<vmem>>, vector<32x128xf32>
    %cst_155 = arith.constant dense<0.000000e+00> : vector<16x128xf32>
    %698 = tpu.matmul %696, %697, %cst_155 {dimension_numbers = #tpu.dot_dimension_numbers<[1], [0], [0], [1], [0, 0, 1, 1], [], []>} : vector<16x32xf32>, vector<32x128xf32>, vector<16x128xf32> -> vector<16x128xf32>
    %c0_156 = arith.constant 0 : index
    %c0_157 = arith.constant 0 : index
    %699 = vector.load %arg9[%c0_156, %c0_157] : memref<1x128xf32, #tpu.memory_space<vmem>>, vector<1x128xf32>
    %700 = vector.broadcast %699 : vector<1x128xf32> to vector<16x128xf32>
    %701 = arith.addf %698, %700 : vector<16x128xf32>
    %c0_158 = arith.constant 0 : index
    %c0_159 = arith.constant 0 : index
    %702 = vector.load %arg10[%c0_158, %c0_159] : memref<16x128xf32, #tpu.memory_space<vmem>>, vector<16x128xf32>
    tpu.vector_store %arg10[%c0_158, %c0_159], %701 {strides = array<i32>} : memref<16x128xf32, #tpu.memory_space<vmem>>, vector<16x128xf32>,
    return
  }
}

</mosaic_0001>

<bundles_post_ra>
// kernel: encdec_forward.1
= control target key start
LH: loop header
LB: loop body
LE: loop exit
PB: predicated region body
PF: predicated region fallthrough
CT: control target
= control target key end

     0   :  { %15 = vsyncpa [#allocation4], 0  ;;  %s3581_s0 = inlined_call_operand.hbm [shape: f32[8,2,96], index: 0, kind: input, shape index: {}]   ;;  %s3582_s1 = inlined_call_operand.hbm [shape: s32[2,1], index: 1, kind: input, shape index: {}]   ;;  %s3583_s2 = inlined_call_operand.hbm [shape: f32[8,2,96], index: 2, kind: input, shape index: {}]   ;;  %s3584_s3 = inlined_call_operand.hbm [shape: s32[2,1], index: 3, kind: input, shape index: {}]   ;;  %s3585_s4 = inlined_call_operand.hbm [shape: f32[32,96], index: 4, kind: input, shape index: {}]   ;;  %s3586_s5 = inlined_call_operand.hbm [shape: f32[1,32], index: 5, kind: input, shape index: {}]   ;;  %s3587_s6 = inlined_call_operand.hbm [shape: f32[32,96], index: 6, kind: input, shape index: {}]   ;;  %s3588_s7 = inlined_call_operand.hbm [shape: f32[1,32], index: 7, kind: input, shape index: {}]   ;;  %s3589_s8 = inlined_call_operand.hbm [shape: f32[32,128], index: 8, kind: input, shape index: {}]   ;;  %s3590_s9 = inlined_call_operand.hbm [shape: f32[1,128], index: 9, kind: input, shape index: {}]   ;;  %s3591_s10 = inlined_call_operand.hbm [shape: f32[16,128], index: 10, kind: output, shape index: {}]  }
   0x1   :  { %16 = vsyncpa [#allocation7], 0 }
   0x2   :  { %17 = vsyncpa [#allocation10], 0 }
   0x3   :  { %18 = vsyncpa [#allocation13], 0 }
   0x4   :  { %19 = vsyncpa [#allocation16], 0 }
   0x5   :  { %20 = vsyncpa [#allocation19], 0 }
   0x6   :  { %21 = vsyncpa [#allocation5], 0  ;;  %s3078_s13 = smov [#allocation6]   ;;  %s3079_s15 = smov [#allocation9]  }
   0x7   :  { %s40_s14 = sshll.u32 %s3078_s13, 4  ;;  %s62_s16 = sshll.u32 %s3079_s15, 4  ;;  %s41_s14 = int_to_ptr.vmem [resolvable:$true] %s40_s14  ;;  %s63_s16 = int_to_ptr.vmem [resolvable:$true] %s62_s16 }
   0x8   :  { %s2822_s19 = scalar_lea.hbm %s3582_s1, 32 }
   0x9   :  { %p2823_p0 = scmp.ne.s32.totalorder %s3582_s1, %s2822_s19  ;;  %p2826_p1 = scmp.lt.u32.totalorder %s2822_s19, %s3582_s1 }
   0xb   :  { %p2828_p2 = pnand %p2826_p1, %p2823_p0 }
   0xd   :  { %2831 = shalt.err (!%p2828_p2)
}
   0xe   :  { %s2832_s24 = scalar_lea.vmem %s41_s14, 32  ;;  %p2837_p4 = scmp.lt.s32.totalorder %s41_s14, %s41_s14 }
   0xf   :  { %p2833_p3 = scmp.ne.s32.totalorder %s41_s14, %s2832_s24  ;;  %p2838_p5 = scmp.lt.s32.totalorder %s2832_s24, %s2832_s24 }
  0x11   :  { %p2839_p6 = por %p2838_p5, %p2837_p4 }
  0x13   :  { %p2840_p7 = pnand %p2839_p6, %p2833_p3 }
  0x15   :  { %2843 = shalt.err (!%p2840_p7)
}
  0x16   :  { %43 = dma.hbm_to_vmem [thread:$0]  %s3582_s1, 32, %s41_s14, [#allocation7]  }
  0x17   :  { %s2844_s29 = scalar_lea.hbm %s3584_s3, 32 }
  0x18   :  { %p2845_p8 = scmp.ne.s32.totalorder %s3584_s3, %s2844_s29  ;;  %p2848_p9 = scmp.lt.u32.totalorder %s2844_s29, %s3584_s3 }
  0x1a   :  { %p2850_p10 = pnand %p2848_p9, %p2845_p8 }
  0x1c   :  { %2853 = shalt.err (!%p2850_p10)
}
  0x1d   :  { %s2854_s15 = scalar_lea.vmem %s63_s16, 32  ;;  %p2859_p12 = scmp.lt.s32.totalorder %s63_s16, %s63_s16 }
  0x1e   :  { %p2855_p11 = scmp.ne.s32.totalorder %s63_s16, %s2854_s15  ;;  %p2860_p13 = scmp.lt.s32.totalorder %s2854_s15, %s2854_s15 }
  0x20   :  { %p2861_p0 = por %p2860_p13, %p2859_p12 }
  0x22   :  { %p2862_p1 = pnand %p2861_p0, %p2855_p11 }
  0x24   :  { %2865 = shalt.err (!%p2862_p1)
}
  0x25   :  { %65 = dma.hbm_to_vmem [thread:$0]  %s3584_s3, 32, %s63_s16, [#allocation10]  }
  0x26   :  { %s3080_s17 = smov [#allocation12]   ;;  %s3081_s19 = smov [#allocation15]  }
  0x27   :  { %s84_s18 = sshll.u32 %s3080_s17, 4  ;;  %s106_s20 = sshll.u32 %s3081_s19, 4  ;;  %s85_s18 = int_to_ptr.vmem [resolvable:$true] %s84_s18  ;;  %s107_s20 = int_to_ptr.vmem [resolvable:$true] %s106_s20 }
  0x28   :  { %s2866_s23 = scalar_lea.hbm %s3586_s5, 16 }
  0x29   :  { %p2867_p2 = scmp.ne.s32.totalorder %s3586_s5, %s2866_s23  ;;  %p2870_p3 = scmp.lt.u32.totalorder %s2866_s23, %s3586_s5 }
  0x2b   :  { %p2872_p4 = pnand %p2870_p3, %p2867_p2 }
  0x2d   :  { %2875 = shalt.err (!%p2872_p4)
}
  0x2e   :  { %s2876_s3 = scalar_lea.vmem %s85_s18, 16  ;;  %s2880_s16 = scalar_lea.vmem %s85_s18, 32 }
  0x2f   :  { %p2877_p5 = scmp.ne.s32.totalorder %s85_s18, %s2876_s3  ;;  %p2881_p6 = scmp.lt.s32.totalorder %s85_s18, %s85_s18 }
  0x30   :  { %p2882_p7 = scmp.lt.s32.totalorder %s2880_s16, %s2876_s3 }
  0x32   :  { %p2883_p8 = por %p2882_p7, %p2881_p6 }
  0x34   :  { %p2884_p9 = pnand %p2883_p8, %p2877_p5 }
  0x36   :  { %2887 = shalt.err (!%p2884_p9)
}
  0x37   :  { %87 = dma.hbm_to_vmem [thread:$0]  %s3586_s5, 16, %s85_s18, [#allocation13]  }
  0x38   :  { %s2888_s12 = scalar_lea.hbm %s3588_s7, 16 }
  0x39   :  { %p2889_p10 = scmp.ne.s32.totalorder %s3588_s7, %s2888_s12  ;;  %p2892_p11 = scmp.lt.u32.totalorder %s2888_s12, %s3588_s7 }
  0x3b   :  { %p2894_p12 = pnand %p2892_p11, %p2889_p10 }
  0x3d   :  { %2897 = shalt.err (!%p2894_p12)
}
  0x3e   :  { %s2898_s17 = scalar_lea.vmem %s107_s20, 16  ;;  %s2902_s19 = scalar_lea.vmem %s107_s20, 32 }
  0x3f   :  { %p2899_p13 = scmp.ne.s32.totalorder %s107_s20, %s2898_s17  ;;  %p2903_p0 = scmp.lt.s32.totalorder %s107_s20, %s107_s20 }
  0x40   :  { %p2904_p1 = scmp.lt.s32.totalorder %s2902_s19, %s2898_s17 }
  0x42   :  { %p2905_p2 = por %p2904_p1, %p2903_p0 }
  0x44   :  { %p2906_p3 = pnand %p2905_p2, %p2899_p13 }
  0x46   :  { %2909 = shalt.err (!%p2906_p3)
}
  0x47   :  { %109 = dma.hbm_to_vmem [thread:$0]  %s3588_s7, 16, %s107_s20, [#allocation16]  }
  0x48   :  { %s3082_s21 = smov [#allocation3]   ;;  %s2910_s25 = scalar_lea.hbm %s3581_s0, 256 }
  0x49   :  { %s27_s22 = sshll.u32 %s3082_s21, 4  ;;  %p2911_p4 = scmp.ne.s32.totalorder %s3581_s0, %s2910_s25  ;;  %s28_s22 = int_to_ptr.vmem [resolvable:$true] %s27_s22 }
  0x4a   :  { %p2914_p5 = scmp.lt.u32.totalorder %s2910_s25, %s3581_s0 }
  0x4c   :  { %p2916_p6 = pnand %p2914_p5, %p2911_p4 }
  0x4e   :  { %2919 = shalt.err (!%p2916_p6)
}
  0x4f   :  { %s2920_s28 = scalar_lea.vmem %s28_s22, 256  ;;  %p2925_p8 = scmp.lt.s32.totalorder %s28_s22, %s28_s22 }
  0x50   :  { %p2921_p7 = scmp.ne.s32.totalorder %s28_s22, %s2920_s28  ;;  %p2926_p9 = scmp.lt.s32.totalorder %s2920_s28, %s2920_s28 }
  0x52   :  { %p2927_p10 = por %p2926_p9, %p2925_p8 }
  0x54   :  { %p2928_p11 = pnand %p2927_p10, %p2921_p7 }
  0x56   :  { %2931 = shalt.err (!%p2928_p11)
}
  0x57   :  { %s3083_s7 = smov 32   ;;  %s3084_s20 = smov 2  }
  0x58   :  { %33 = dma.hbm_to_vmem [thread:$0]  %s3581_s0, 256, %s28_s22, [#allocation4], %s3083_s7, %s3083_s7, %s3084_s20  }
  0x59   :  { %s3085_s11 = smov [#allocation8]   ;;  %s3086_s13 = smov [#allocation11]  }
  0x5a   :  { %s49_s12 = sshll.u32 %s3085_s11, 4  ;;  %s71_s15 = sshll.u32 %s3086_s13, 4  ;;  %s50_s12 = int_to_ptr.vmem [resolvable:$true] %s49_s12  ;;  %s72_s15 = int_to_ptr.vmem [resolvable:$true] %s71_s15 }
  0x5b   :  { %s2932_s17 = scalar_lea.hbm %s3583_s2, 256 }
  0x5c   :  { %p2933_p12 = scmp.ne.s32.totalorder %s3583_s2, %s2932_s17  ;;  %p2936_p13 = scmp.lt.u32.totalorder %s2932_s17, %s3583_s2 }
  0x5e   :  { %p2938_p0 = pnand %p2936_p13, %p2933_p12 }
  0x60   :  { %2941 = shalt.err (!%p2938_p0)
}
  0x61   :  { %s2942_s0 = scalar_lea.vmem %s50_s12, 256  ;;  %p2947_p2 = scmp.lt.s32.totalorder %s50_s12, %s50_s12 }
  0x62   :  { %p2943_p1 = scmp.ne.s32.totalorder %s50_s12, %s2942_s0  ;;  %p2948_p3 = scmp.lt.s32.totalorder %s2942_s0, %s2942_s0 }
  0x64   :  { %p2949_p4 = por %p2948_p3, %p2947_p2 }
  0x66   :  { %p2950_p5 = pnand %p2949_p4, %p2943_p1 }
  0x68   :  { %2953 = shalt.err (!%p2950_p5)
}
  0x69   :  { %55 = dma.hbm_to_vmem [thread:$0]  %s3583_s2, 256, %s50_s12, [#allocation7], %s3083_s7, %s3083_s7, %s3084_s20  }
  0x6a   :  { %s2954_s26 = scalar_lea.hbm %s3585_s4, 512 }
  0x6b   :  { %p2955_p6 = scmp.ne.s32.totalorder %s3585_s4, %s2954_s26  ;;  %p2958_p7 = scmp.lt.u32.totalorder %s2954_s26, %s3585_s4 }
  0x6d   :  { %p2960_p8 = pnand %p2958_p7, %p2955_p6 }
  0x6f   :  { %2963 = shalt.err (!%p2960_p8)
}
  0x70   :  { %s2964_s29 = scalar_lea.vmem %s72_s15, 512  ;;  %p2969_p10 = scmp.lt.s32.totalorder %s72_s15, %s72_s15 }
  0x71   :  { %p2965_p9 = scmp.ne.s32.totalorder %s72_s15, %s2964_s29  ;;  %p2970_p11 = scmp.lt.s32.totalorder %s2964_s29, %s2964_s29 }
  0x73   :  { %p2971_p12 = por %p2970_p11, %p2969_p10 }
  0x75   :  { %p2972_p13 = pnand %p2971_p12, %p2965_p9 }
  0x77   :  { %2975 = shalt.err (!%p2972_p13)
}
  0x78   :  { %s3087_s2 = smov 128   ;;  %s3088_s7 = smov 8  }
  0x79   :  { %77 = dma.hbm_to_vmem [thread:$0]  %s3585_s4, 512, %s72_s15, [#allocation10], %s3087_s2, %s3087_s2, %s3088_s7  }
  0x7a   :  { %s3089_s11 = smov [#allocation14]   ;;  %s3090_s13 = smov [#allocation17]  }
  0x7b   :  { %s93_s12 = sshll.u32 %s3089_s11, 4  ;;  %s115_s1 = sshll.u32 %s3090_s13, 4  ;;  %s94_s12 = int_to_ptr.vmem [resolvable:$true] %s93_s12  ;;  %s116_s1 = int_to_ptr.vmem [resolvable:$true] %s115_s1 }
  0x7c   :  { %s2976_s19 = scalar_lea.hbm %s3587_s6, 512 }
  0x7d   :  { %p2977_p0 = scmp.ne.s32.totalorder %s3587_s6, %s2976_s19  ;;  %p2980_p1 = scmp.lt.u32.totalorder %s2976_s19, %s3587_s6 }
  0x7f   :  { %p2982_p2 = pnand %p2980_p1, %p2977_p0 }
  0x81   :  { %2985 = shalt.err (!%p2982_p2)
}
  0x82   :  { %s2986_s4 = scalar_lea.vmem %s94_s12, 512  ;;  %p2991_p4 = scmp.lt.s32.totalorder %s94_s12, %s94_s12 }
  0x83   :  { %p2987_p3 = scmp.ne.s32.totalorder %s94_s12, %s2986_s4  ;;  %p2992_p5 = scmp.lt.s32.totalorder %s2986_s4, %s2986_s4 }
  0x85   :  { %p2993_p6 = por %p2992_p5, %p2991_p4 }
  0x87   :  { %p2994_p7 = pnand %p2993_p6, %p2987_p3 }
  0x89   :  { %2997 = shalt.err (!%p2994_p7)
}
  0x8a   :  { %99 = dma.hbm_to_vmem [thread:$0]  %s3587_s6, 512, %s94_s12, [#allocation13], %s3087_s2, %s3087_s2, %s3088_s7  }
  0x8b   :  { %s2998_s25 = scalar_lea.hbm %s3589_s8, 512 }
  0x8c   :  { %p2999_p8 = scmp.ne.s32.totalorder %s3589_s8, %s2998_s25  ;;  %p3002_p9 = scmp.lt.u32.totalorder %s2998_s25, %s3589_s8 }
  0x8e   :  { %p3004_p10 = pnand %p3002_p9, %p2999_p8 }
  0x90   :  { %3007 = shalt.err (!%p3004_p10)
}
  0x91   :  { %s3008_s28 = scalar_lea.vmem %s116_s1, 512  ;;  %p3013_p12 = scmp.lt.s32.totalorder %s116_s1, %s116_s1 }
  0x92   :  { %p3009_p11 = scmp.ne.s32.totalorder %s116_s1, %s3008_s28  ;;  %p3014_p13 = scmp.lt.s32.totalorder %s3008_s28, %s3008_s28 }
  0x94   :  { %p3015_p0 = por %p3014_p13, %p3013_p12 }
  0x96   :  { %p3016_p1 = pnand %p3015_p0, %p3009_p11 }
  0x98   :  { %3019 = shalt.err (!%p3016_p1)
}
  0x99   :  { %121 = dma.hbm_to_vmem [thread:$0]  %s3589_s8, 512, %s116_s1, [#allocation16], %s3087_s2, %s3087_s2, %s3088_s7  }
  0x9a   :  { %s3091_s20 = smov [#allocation18]   ;;  %s3020_s13 = scalar_lea.hbm %s3590_s9, 16 }
  0x9b   :  { %s128_s30 = sshll.u32 %s3091_s20, 4  ;;  %p3021_p2 = scmp.ne.s32.totalorder %s3590_s9, %s3020_s13  ;;  %s129_s30 = int_to_ptr.vmem [resolvable:$true] %s128_s30 }
  0x9c   :  { %p3024_p3 = scmp.lt.u32.totalorder %s3020_s13, %s3590_s9 }
  0x9e   :  { %p3026_p4 = pnand %p3024_p3, %p3021_p2 }
  0xa0   :  { %3029 = shalt.err (!%p3026_p4)
}
  0xa1   :  { %s3030_s18 = scalar_lea.vmem %s129_s30, 16  ;;  %s3034_s8 = scalar_lea.vmem %s129_s30, 32 }
  0xa2   :  { %p3031_p5 = scmp.ne.s32.totalorder %s129_s30, %s3030_s18  ;;  %p3035_p6 = scmp.lt.s32.totalorder %s129_s30, %s129_s30 }
  0xa3   :  { %p3036_p7 = scmp.lt.s32.totalorder %s3034_s8, %s3030_s18 }
  0xa5   :  { %p3037_p8 = por %p3036_p7, %p3035_p6 }
  0xa7   :  { %p3038_p9 = pnand %p3037_p8, %p3031_p5 }
  0xa9   :  { %3041 = shalt.err (!%p3038_p9)
}
  0xaa   :  { %131 = dma.hbm_to_vmem [thread:$0]  %s3590_s9, 16, %s129_s30, [#allocation19]  }
  0xab   :  { %3064 = dma.done.wait [#allocation4], 256  }
  0xac   :  { %3065 = vsyncadd [#allocation4], 4294967040 }
  0xad   :  { %3066 = dma.done.wait [#allocation7], 288  }
  0xae   :  { %3067 = vsyncadd [#allocation7], 4294967008 }
  0xaf   :  { %3068 = dma.done.wait [#allocation10], 544  }
  0xb0   :  { %3069 = vsyncadd [#allocation10], 4294966752 }
  0xb1   :  { %3070 = dma.done.wait [#allocation13], 528  }
  0xb2   :  { %3071 = vsyncadd [#allocation13], 4294966768 }
  0xb3   :  { %3072 = dma.done.wait [#allocation16], 528  }
  0xb4   :  { %3073 = vsyncadd [#allocation16], 4294966768 }
  0xb5   :  { %3074 = dma.done.wait [#allocation19], 16  }
  0xb6   :  { %3075 = vsyncadd [#allocation19], 4294967280  ;;  %v3092_v0 = vmov 0.0|0.0   ;;  %vm3093_vm0 = vmmov 0   ;;  %v3094_v1 = vmov 0.0   ;;  %v162_v2 = vld [vmem:[#allocation11] sm:$0xff] }
  0xb7   :  { %2599 = vmatprep.subr.bf16.mxu0 %v3092_v0  ;;  %2420 = vmatprep.mubr.msk.f32.mxu0 %vm3093_vm0, %v3094_v1  ;;  %v163_v3 = vld [vmem:[#allocation11 + $0x8] sm:$0xff]  ;;  %v164_v4 = vld [vmem:[#allocation11 + $0x10] sm:$0xff]  ;;  %v165_v6 = vld [vmem:[#allocation11 + $0x18] sm:$0xff]  ;;  %s3095_s9 = smov 64   ;;  %v3096_v9 = vmov 0   ;;  %s3097_s0 = smov 96  }
  0xb8   :  { %2605 = vmatprep.subr.bf16.mxu1 %v3092_v0  ;;  %2431 = vmatprep.mubr.msk.f32.mxu1 %vm3093_vm0, %v3094_v1  ;;  %v3289_v5 = vpack.c.bf16 %v163_v3, %v162_v2  ;;  %v2276_v7 = vld [vmem:[#allocation12] ss:$0 sm:$0xff]  ;;  %v3293_v8 = vpack.c.bf16 %v165_v6, %v164_v4  ;;  %v3309_v10 = vld [vmem:[#allocation6] sm:$0x3]  ;;  %v171_v17 = vld [vmem:[#allocation3] sm:$0x3] }
  0xb9   :  { %258 = vrot.lane.b32.xlu0 %v2276_v7, %s3095_s9  ;;  %2724 = vset.pattern.permute.xlu1 %v3096_v9  ;;  %vm168_vm1 = vcmp.gt.s32.totalorder %v3309_v10, 0  ;;  %vm172_vm2 = vcmask 261120   ;;  %vm295_vm3 = vcmp.gt.s32.totalorder %v3309_v10, 1  ;;  %v299_v43 = vld [vmem:[#allocation3 + $0x2] sm:$0x3]  ;;  %vm416_vm4 = vcmp.gt.s32.totalorder %v3309_v10, 2 }
  0xba   :  { %2601 = vmatpush3.bf16.msra.mxu0 %v3289_v5  ;;  %2607 = vmatpush3.bf16.msra.mxu1 %v3289_v5  ;;  %v2274_v15 = vsel %vm168_vm1, 1.0, %v3094_v1  ;;  %v2277_v42 = vsel %vm295_vm3, 1.0, %v3094_v1  ;;  %vm537_vm5 = vcmp.gt.s32.totalorder %v3309_v10, 3  ;;  %vm658_vm6 = vcmp.gt.s32.totalorder %v3309_v10, 4  ;;  %s3098_s4 = smov [#allocation20]  }
  0xbb   :  { %2602 = vmatprep.subr.bf16.mxu0 %v3092_v0  ;;  %2608 = vmatprep.subr.bf16.mxu1 %v3092_v0  ;;  %v287_v16 = vsub.f32 1.0, %v2274_v15  ;;  %v408_v51 = vsub.f32 1.0, %v2277_v42  ;;  %vm779_vm7 = vcmp.gt.s32.totalorder %v3309_v10, 5  ;;  %vm900_vm8 = vcmp.gt.s32.totalorder %v3309_v10, 6  ;;  %s2257_s15 = sshll.u32 %s3098_s4, 4  ;;  %s2258_s15 = int_to_ptr.vmem [resolvable:$true] %s2257_s15 }
  0xbc   :  { %2725 = vset.pattern.permute.xlu0 %v3096_v9  ;;  %v2280_v9 = vsel %vm416_vm4, 1.0, %v3094_v1  ;;  %vm1021_vm9 = vcmp.gt.s32.totalorder %v3309_v10, 7  ;;  %vm1280_vm3 = vcmask 254976   ;;  %s3042_s22 = scalar_lea.vmem %s2258_s15, 256  ;;  %p3047_p11 = scmp.lt.s32.totalorder %s2258_s15, %s2258_s15 }
  0xbd   :  { %p3043_p10 = scmp.ne.s32.totalorder %s2258_s15, %s3042_s22  ;;  %p3048_p12 = scmp.lt.s32.totalorder %s3042_s22, %s3042_s22 }
  0xbe   :  { %2604 = vmatpush3.bf16.msra.mxu0 %v3293_v8  ;;  %2610 = vmatpush3.bf16.msra.mxu1 %v3293_v8 }
  0xbf   :  { %2611 = vmatprep.subr.bf16.mxu0 %v3092_v0  ;;  %2617 = vmatprep.subr.bf16.mxu1 %v3092_v0  ;;  %p3049_p13 = por %p3048_p12, %p3047_p11 }
  0xc1   :  { %2421 = vmatmul.mubr.f32.vlgmr.msra.gmra.mrb[0].mxu0 %v3094_v1  ;;  %p3050_p0 = pnand %p3049_p13, %p3043_p10 }
  0xc2   :  { %2613 = vmatpush3.bf16.msra.mxu0 %v3289_v5  ;;  %2442 = vmatprep.mubr.msk.f32.mxu0 %vm3093_vm0, %v3094_v1 }
  0xc3   :  { %2614 = vmatprep.subr.bf16.mxu0 %v3092_v0 }
  0xc6   :  { %2616 = vmatpush3.bf16.msra.mxu0 %v3293_v8 }
  0xc7   :  { %2623 = vmatprep.subr.bf16.mxu0 %v3092_v0 }
 0x12b   :  { %v3311_v11 = vpop.permute.xlu0 %258 }
 0x194   :  { %v242_v12 = vpop.f32.mrb[0].mxu0 }
 0x195   :  { %v261_v13 = vadd.f32 %v3311_v11, %v242_v12  ;;  %v2422_v14 = vpop.f32.mrb[1].mxu0  ;;  %v246_v18 = vadd.f32 %v242_v12, %v171_v17  ;;  %v420_v12 = vld [vmem:[#allocation3 + $0x4] sm:$0x3] }
 0x197   :  { %263 = vrot.lane.b32.xlu0 %v261_v13, %s3095_s9  ;;  %v2275_v19 = vmul.f32 -1.442695, %v246_v18 }
 0x199   :  { %2726 = vpow2.f32 %v2275_v19 }
 0x19b   :  { %290 = vperm.xlu0 %2725, %v287_v16  }
 0x1a3   :  { %v2727_v20 = vpop.eup %2726 }
 0x1a4   :  { %v250_v21 = vadd.f32 1.0, %v2727_v20  ;;  %v529_v20 = vsub.f32 1.0, %v2280_v9 }
 0x1a6   :  { %2728 = vrcp.f32 %v250_v21 }
 0x1b0   :  { %v2729_v22 = vpop.eup %2728 }
 0x1b1   :  { %v273_v29 = vsub.f32 1.0, %v2729_v22  ;;  %v279_v32 = vmul.f32 0.0, %v2729_v22 }
 0x209   :  { %v264_v23 = vpop.permute.xlu0 %263 }
 0x20a   :  { %v266_v24 = vmul.f32 %v2729_v22, %v264_v23 }
 0x20c   :  { %268 = vrot.lane.b32.xlu1 %v266_v24, %s3095_s9 }
 0x210   :  { %283 = vperm.xlu1 %2724, %v2274_v15  }
 0x21a   :  { %v291_v31 = vpop.permute.xlu0 %290 }
 0x21b   :  { %v293_v35 = vmul.f32 0.0, %v291_v31 }
 0x27e   :  { %v269_v25 = vpop.permute.xlu1 %268 }
 0x27f   :  { %v271_v26 = vadd.f32 %v269_v25, %v171_v17 }
 0x281   :  { %2730 = vtanh.f32 %v271_v26 }
 0x28b   :  { %v2731_v27 = vpop.eup %2730 }
 0x28c   :  { %275 = vrot.lane.b32.xlu1 %v2731_v27, %s3097_s0 }
 0x28f   :  { %v284_v28 = vpop.permute.xlu1 %283 }
 0x2fe   :  { %v276_v30 = vpop.permute.xlu1 %275 }
 0x2ff   :  { %v278_v33 = vmul.f32 %v276_v30, %v273_v29 }
 0x301   :  { %v280_v34 = vadd.f32 %v279_v32, %v278_v33 }
 0x303   :  { %v286_v36 = vmul.f32 %v284_v28, %v280_v34 }
 0x305   :  { %v294_v37 = vadd.f32 %v293_v35, %v286_v36 }
 0x307   :  { %301 = vrot.lane.b32.xlu1 %v294_v37, %s3097_s0 }
 0x379   :  { %v302_v38 = vpop.permute.xlu1 %301 }
 0x37a   :  { %2432 = vmatmul.mubr.msk.f32.vlgmr.msra.gmra.mrb[0].mxu1 %vm172_vm2, %v302_v38  ;;  %v2283_v38 = vsel %vm537_vm5, 1.0, %v3094_v1 }
 0x37b   :  { %2619 = vmatpush3.bf16.msra.mxu1 %v3289_v5  ;;  %2453 = vmatprep.mubr.msk.f32.mxu1 %vm3093_vm0, %v3094_v1 }
 0x37c   :  { %2620 = vmatprep.subr.bf16.mxu1 %v3092_v0 }
 0x37f   :  { %2622 = vmatpush3.bf16.msra.mxu1 %v3293_v8 }
 0x380   :  { %2629 = vmatprep.subr.bf16.mxu1 %v3092_v0 }
 0x44d   :  { %v371_v39 = vpop.f32.mrb[0].mxu1 }
 0x44e   :  { %v382_v40 = vadd.f32 %v371_v39, %v3311_v11  ;;  %v2433_v41 = vpop.f32.mrb[1].mxu1  ;;  %v375_v44 = vadd.f32 %v371_v39, %v299_v43  ;;  %v541_v39 = vld [vmem:[#allocation3 + $0x6] sm:$0x3] }
 0x450   :  { %384 = vrot.lane.b32.xlu0 %v382_v40, %s3095_s9  ;;  %v2279_v45 = vmul.f32 -1.442695, %v375_v44 }
 0x452   :  { %2732 = vpow2.f32 %v2279_v45 }
 0x454   :  { %404 = vperm.xlu0 %2725, %v2277_v42  }
 0x45c   :  { %v2733_v46 = vpop.eup %2732 }
 0x45d   :  { %v379_v47 = vadd.f32 1.0, %v2733_v46 }
 0x45f   :  { %2734 = vrcp.f32 %v379_v47  ;;  %v650_v47 = vsub.f32 1.0, %v2283_v38 }
 0x469   :  { %v2735_v48 = vpop.eup %2734 }
 0x46a   :  { %v394_v56 = vsub.f32 1.0, %v2735_v48  ;;  %v400_v58 = vmul.f32 %v2735_v48, %v294_v37 }
 0x4c2   :  { %v385_v49 = vpop.permute.xlu0 %384 }
 0x4c3   :  { %v387_v50 = vmul.f32 %v2735_v48, %v385_v49 }
 0x4c5   :  { %389 = vrot.lane.b32.xlu1 %v387_v50, %s3095_s9 }
 0x4c9   :  { %411 = vperm.xlu1 %2724, %v408_v51  }
 0x4d3   :  { %v405_v55 = vpop.permute.xlu0 %404 }
 0x537   :  { %v390_v52 = vpop.permute.xlu1 %389 }
 0x538   :  { %v392_v53 = vadd.f32 %v390_v52, %v299_v43 }
 0x53a   :  { %2736 = vtanh.f32 %v392_v53 }
 0x544   :  { %v2737_v54 = vpop.eup %2736 }
 0x545   :  { %396 = vrot.lane.b32.xlu0 %v2737_v54, %s3097_s0 }
 0x548   :  { %v412_v60 = vpop.permute.xlu1 %411 }
 0x549   :  { %v414_v62 = vmul.f32 %v412_v60, %v294_v37 }
 0x5b7   :  { %v397_v57 = vpop.permute.xlu0 %396 }
 0x5b8   :  { %v399_v59 = vmul.f32 %v397_v57, %v394_v56 }
 0x5ba   :  { %v401_v61 = vadd.f32 %v400_v58, %v399_v59 }
 0x5bc   :  { %v407_v63 = vmul.f32 %v405_v55, %v401_v61 }
 0x5be   :  { %v415_v2 = vadd.f32 %v414_v62, %v407_v63 }
 0x5c0   :  { %422 = vrot.lane.b32.xlu1 %v415_v2, %s3097_s0 }
 0x632   :  { %v423_v3 = vpop.permute.xlu1 %422 }
 0x633   :  { %2443 = vmatmul.mubr.msk.f32.vlgmr.msra.gmra.mrb[2].mxu0 %vm172_vm2, %v423_v3  ;;  %v2286_v3 = vsel %vm658_vm6, 1.0, %v3094_v1 }
 0x634   :  { %2625 = vmatpush3.bf16.msra.mxu0 %v3289_v5  ;;  %2464 = vmatprep.mubr.msk.f32.mxu0 %vm3093_vm0, %v3094_v1 }
 0x635   :  { %2626 = vmatprep.subr.bf16.mxu0 %v3092_v0 }
 0x638   :  { %2628 = vmatpush3.bf16.msra.mxu0 %v3293_v8 }
 0x639   :  { %2635 = vmatprep.subr.bf16.mxu0 %v3092_v0 }
 0x706   :  { %v492_v4 = vpop.f32.mrb[2].mxu0 }
 0x707   :  { %v503_v6 = vadd.f32 %v492_v4, %v3311_v11  ;;  %v2444_v7 = vpop.f32.mrb[3].mxu0  ;;  %v496_v13 = vadd.f32 %v492_v4, %v420_v12  ;;  %v662_v4 = vld [vmem:[#allocation3 + $0x8] sm:$0x3] }
 0x709   :  { %505 = vrot.lane.b32.xlu0 %v503_v6, %s3095_s9  ;;  %v2282_v14 = vmul.f32 -1.442695, %v496_v13 }
 0x70b   :  { %2738 = vpow2.f32 %v2282_v14 }
 0x70d   :  { %525 = vperm.xlu0 %2725, %v2280_v9  }
 0x715   :  { %v2739_v15 = vpop.eup %2738 }
 0x716   :  { %v500_v16 = vadd.f32 1.0, %v2739_v15 }
 0x718   :  { %2740 = vrcp.f32 %v500_v16  ;;  %v771_v16 = vsub.f32 1.0, %v2286_v3 }
 0x722   :  { %v2741_v17 = vpop.eup %2740 }
 0x723   :  { %v515_v25 = vsub.f32 1.0, %v2741_v17  ;;  %v521_v27 = vmul.f32 %v2741_v17, %v415_v2 }
 0x77b   :  { %v506_v18 = vpop.permute.xlu0 %505 }
 0x77c   :  { %v508_v19 = vmul.f32 %v2741_v17, %v506_v18 }
 0x77e   :  { %510 = vrot.lane.b32.xlu1 %v508_v19, %s3095_s9 }
 0x782   :  { %532 = vperm.xlu1 %2724, %v529_v20  }
 0x78c   :  { %v526_v24 = vpop.permute.xlu0 %525 }
 0x7f0   :  { %v511_v21 = vpop.permute.xlu1 %510 }
 0x7f1   :  { %v513_v22 = vadd.f32 %v511_v21, %v420_v12 }
 0x7f3   :  { %2742 = vtanh.f32 %v513_v22 }
 0x7fd   :  { %v2743_v23 = vpop.eup %2742 }
 0x7fe   :  { %517 = vrot.lane.b32.xlu0 %v2743_v23, %s3097_s0 }
 0x801   :  { %v533_v29 = vpop.permute.xlu1 %532 }
 0x802   :  { %v535_v31 = vmul.f32 %v533_v29, %v415_v2 }
 0x870   :  { %v518_v26 = vpop.permute.xlu0 %517 }
 0x871   :  { %v520_v28 = vmul.f32 %v518_v26, %v515_v25 }
 0x873   :  { %v522_v30 = vadd.f32 %v521_v27, %v520_v28 }
 0x875   :  { %v528_v32 = vmul.f32 %v526_v24, %v522_v30 }
 0x877   :  { %v536_v33 = vadd.f32 %v535_v31, %v528_v32 }
 0x879   :  { %543 = vrot.lane.b32.xlu1 %v536_v33, %s3097_s0 }
 0x8eb   :  { %v544_v34 = vpop.permute.xlu1 %543 }
 0x8ec   :  { %2454 = vmatmul.mubr.msk.f32.vlgmr.msra.gmra.mrb[2].mxu1 %vm172_vm2, %v544_v34  ;;  %v2289_v34 = vsel %vm779_vm7, 1.0, %v3094_v1 }
 0x8ed   :  { %2631 = vmatpush3.bf16.msra.mxu1 %v3289_v5  ;;  %2475 = vmatprep.mubr.msk.f32.mxu1 %vm3093_vm0, %v3094_v1 }
 0x8ee   :  { %2632 = vmatprep.subr.bf16.mxu1 %v3092_v0 }
 0x8f1   :  { %2634 = vmatpush3.bf16.msra.mxu1 %v3293_v8 }
 0x8f2   :  { %2641 = vmatprep.subr.bf16.mxu1 %v3092_v0 }
 0x9bf   :  { %v613_v35 = vpop.f32.mrb[2].mxu1 }
 0x9c0   :  { %v624_v36 = vadd.f32 %v613_v35, %v3311_v11  ;;  %v2455_v37 = vpop.f32.mrb[3].mxu1  ;;  %v617_v40 = vadd.f32 %v613_v35, %v541_v39 }
 0x9c2   :  { %626 = vrot.lane.b32.xlu0 %v624_v36, %s3095_s9  ;;  %v2285_v41 = vmul.f32 -1.442695, %v617_v40 }
 0x9c4   :  { %2744 = vpow2.f32 %v2285_v41  ;;  %v892_v41 = vsub.f32 1.0, %v2289_v34 }
 0x9c6   :  { %646 = vperm.xlu0 %2725, %v2283_v38  }
 0x9ce   :  { %v2745_v42 = vpop.eup %2744 }
 0x9cf   :  { %v621_v43 = vadd.f32 1.0, %v2745_v42 }
 0x9d1   :  { %2746 = vrcp.f32 %v621_v43 }
 0x9db   :  { %v2747_v44 = vpop.eup %2746 }
 0x9dc   :  { %v636_v52 = vsub.f32 1.0, %v2747_v44  ;;  %v642_v54 = vmul.f32 %v2747_v44, %v536_v33 }
 0xa34   :  { %v627_v45 = vpop.permute.xlu0 %626 }
 0xa35   :  { %v629_v46 = vmul.f32 %v2747_v44, %v627_v45 }
 0xa37   :  { %631 = vrot.lane.b32.xlu1 %v629_v46, %s3095_s9 }
 0xa3b   :  { %653 = vperm.xlu1 %2724, %v650_v47  }
 0xa45   :  { %v647_v51 = vpop.permute.xlu0 %646 }
 0xaa9   :  { %v632_v48 = vpop.permute.xlu1 %631 }
 0xaaa   :  { %v634_v49 = vadd.f32 %v632_v48, %v541_v39 }
 0xaac   :  { %2748 = vtanh.f32 %v634_v49 }
 0xab6   :  { %v2749_v50 = vpop.eup %2748 }
 0xab7   :  { %638 = vrot.lane.b32.xlu0 %v2749_v50, %s3097_s0 }
 0xaba   :  { %v654_v56 = vpop.permute.xlu1 %653 }
 0xabb   :  { %v656_v58 = vmul.f32 %v654_v56, %v536_v33 }
 0xb29   :  { %v639_v53 = vpop.permute.xlu0 %638 }
 0xb2a   :  { %v641_v55 = vmul.f32 %v639_v53, %v636_v52 }
 0xb2c   :  { %v643_v57 = vadd.f32 %v642_v54, %v641_v55 }
 0xb2e   :  { %v649_v59 = vmul.f32 %v647_v51, %v643_v57 }
 0xb30   :  { %v657_v60 = vadd.f32 %v656_v58, %v649_v59  ;;  %v2292_v59 = vsel %vm900_vm8, 1.0, %v3094_v1 }
 0xb32   :  { %664 = vrot.lane.b32.xlu1 %v657_v60, %s3097_s0 }
 0xba4   :  { %v665_v61 = vpop.permute.xlu1 %664 }
 0xba5   :  { %2465 = vmatmul.mubr.msk.f32.vlgmr.msra.gmra.mrb[4].mxu0 %vm172_vm2, %v665_v61 }
 0xba6   :  { %2637 = vmatpush3.bf16.msra.mxu0 %v3289_v5  ;;  %2486 = vmatprep.mubr.msk.f32.mxu0 %vm3093_vm0, %v3094_v1 }
 0xba7   :  { %2638 = vmatprep.subr.bf16.mxu0 %v3092_v0 }
 0xbaa   :  { %2640 = vmatpush3.bf16.msra.mxu0 %v3293_v8 }
 0xbab   :  { %2647 = vmatprep.subr.bf16.mxu0 %v3092_v0 }
 0xc78   :  { %v734_v62 = vpop.f32.mrb[4].mxu0 }
 0xc79   :  { %v745_v63 = vadd.f32 %v734_v62, %v3311_v11  ;;  %v2466_v2 = vpop.f32.mrb[5].mxu0  ;;  %v738_v6 = vadd.f32 %v734_v62, %v662_v4 }
 0xc7b   :  { %747 = vrot.lane.b32.xlu0 %v745_v63, %s3095_s9  ;;  %v2288_v7 = vmul.f32 -1.442695, %v738_v6 }
 0xc7d   :  { %2750 = vpow2.f32 %v2288_v7  ;;  %v1013_v7 = vsub.f32 1.0, %v2292_v59 }
 0xc7f   :  { %767 = vperm.xlu0 %2725, %v2286_v3  }
 0xc87   :  { %v2751_v9 = vpop.eup %2750 }
 0xc88   :  { %v742_v12 = vadd.f32 1.0, %v2751_v9 }
 0xc8a   :  { %2752 = vrcp.f32 %v742_v12 }
 0xc94   :  { %v2753_v13 = vpop.eup %2752 }
 0xc95   :  { %v757_v21 = vsub.f32 1.0, %v2753_v13  ;;  %v763_v23 = vmul.f32 %v2753_v13, %v657_v60 }
 0xced   :  { %v748_v14 = vpop.permute.xlu0 %747 }
 0xcee   :  { %v750_v15 = vmul.f32 %v2753_v13, %v748_v14 }
 0xcf0   :  { %752 = vrot.lane.b32.xlu1 %v750_v15, %s3095_s9 }
 0xcf4   :  { %774 = vperm.xlu1 %2724, %v771_v16  }
 0xcfe   :  { %v768_v20 = vpop.permute.xlu0 %767 }
 0xd62   :  { %v753_v17 = vpop.permute.xlu1 %752 }
 0xd63   :  { %v755_v18 = vadd.f32 %v753_v17, %v662_v4 }
 0xd65   :  { %2754 = vtanh.f32 %v755_v18 }
 0xd6f   :  { %v2755_v19 = vpop.eup %2754 }
 0xd70   :  { %759 = vrot.lane.b32.xlu0 %v2755_v19, %s3097_s0 }
 0xd73   :  { %v775_v25 = vpop.permute.xlu1 %774 }
 0xd74   :  { %v777_v27 = vmul.f32 %v775_v25, %v657_v60  ;;  %v904_v60 = vld [vmem:[#allocation3 + $0xc] sm:$0x3] }
 0xde2   :  { %v760_v22 = vpop.permute.xlu0 %759 }
 0xde3   :  { %v762_v24 = vmul.f32 %v760_v22, %v757_v21 }
 0xde5   :  { %v764_v26 = vadd.f32 %v763_v23, %v762_v24 }
 0xde7   :  { %v770_v28 = vmul.f32 %v768_v20, %v764_v26 }
 0xde9   :  { %v778_v29 = vadd.f32 %v777_v27, %v770_v28  ;;  %v2295_v28 = vsel %vm1021_vm9, 1.0, %v3094_v1 }
 0xdeb   :  { %785 = vrot.lane.b32.xlu1 %v778_v29, %s3097_s0 }
 0xe5d   :  { %v786_v30 = vpop.permute.xlu1 %785 }
 0xe5e   :  { %2476 = vmatmul.mubr.msk.f32.vlgmr.msra.gmra.mrb[4].mxu1 %vm172_vm2, %v786_v30 }
 0xe5f   :  { %2643 = vmatpush3.bf16.msra.mxu1 %v3289_v5  ;;  %2497 = vmatprep.mubr.msk.f32.mxu1 %vm3093_vm0, %v3094_v1  ;;  %v783_v5 = vld [vmem:[#allocation3 + $0xa] sm:$0x3] }
 0xe60   :  { %2644 = vmatprep.subr.bf16.mxu1 %v3092_v0 }
 0xe63   :  { %2646 = vmatpush3.bf16.msra.mxu1 %v3293_v8 }
 0xe64   :  { %2653 = vmatprep.subr.bf16.mxu1 %v3092_v0 }
 0xf31   :  { %v855_v31 = vpop.f32.mrb[4].mxu1 }
 0xf32   :  { %v866_v32 = vadd.f32 %v855_v31, %v3311_v11  ;;  %v2477_v33 = vpop.f32.mrb[5].mxu1  ;;  %v859_v35 = vadd.f32 %v855_v31, %v783_v5 }
 0xf34   :  { %868 = vrot.lane.b32.xlu0 %v866_v32, %s3095_s9  ;;  %v2291_v36 = vmul.f32 -1.442695, %v859_v35 }
 0xf36   :  { %2756 = vpow2.f32 %v2291_v36  ;;  %v1134_v36 = vsub.f32 1.0, %v2295_v28 }
 0xf38   :  { %888 = vperm.xlu0 %2725, %v2289_v34  }
 0xf40   :  { %v2757_v37 = vpop.eup %2756 }
 0xf41   :  { %v863_v38 = vadd.f32 1.0, %v2757_v37  ;;  %v1142_v37 = vld [vmem:[#allocation14] sm:$0xff] }
 0xf43   :  { %2758 = vrcp.f32 %v863_v38  ;;  %v1143_v38 = vld [vmem:[#allocation14 + $0x8] sm:$0xff] }
 0xf4d   :  { %v2759_v8 = vpop.eup %2758 }
 0xf4e   :  { %v878_v46 = vsub.f32 1.0, %v2759_v8  ;;  %v884_v48 = vmul.f32 %v2759_v8, %v778_v29 }
 0xfa6   :  { %v869_v39 = vpop.permute.xlu0 %868 }
 0xfa7   :  { %v871_v40 = vmul.f32 %v2759_v8, %v869_v39  ;;  %v1144_v8 = vld [vmem:[#allocation14 + $0x10] sm:$0xff]  ;;  %v3408_v39 = vpack.c.bf16 %v1143_v38, %v1142_v37 }
 0xfa9   :  { %873 = vrot.lane.b32.xlu1 %v871_v40, %s3095_s9  ;;  %v1145_v40 = vld [vmem:[#allocation14 + $0x18] sm:$0xff] }
 0xfad   :  { %895 = vperm.xlu1 %2724, %v892_v41   ;;  %v3411_v41 = vpack.c.bf16 %v1145_v40, %v1144_v8 }
 0xfb7   :  { %v889_v45 = vpop.permute.xlu0 %888 }
0x101b   :  { %v874_v42 = vpop.permute.xlu1 %873 }
0x101c   :  { %v876_v43 = vadd.f32 %v874_v42, %v783_v5 }
0x101e   :  { %2760 = vtanh.f32 %v876_v43 }
0x1028   :  { %v2761_v44 = vpop.eup %2760 }
0x1029   :  { %880 = vrot.lane.b32.xlu0 %v2761_v44, %s3097_s0  ;;  %v2301_v44 = vld [vmem:[#allocation15] ss:$0 sm:$0xff] }
0x102c   :  { %v896_v50 = vpop.permute.xlu1 %895 }
0x102d   :  { %v898_v52 = vmul.f32 %v896_v50, %v778_v29  ;;  %v1025_v29 = vld [vmem:[#allocation3 + $0xe] sm:$0x3] }
0x109b   :  { %v881_v47 = vpop.permute.xlu0 %880 }
0x109c   :  { %v883_v49 = vmul.f32 %v881_v47, %v878_v46 }
0x109e   :  { %v885_v51 = vadd.f32 %v884_v48, %v883_v49 }
0x10a0   :  { %v891_v53 = vmul.f32 %v889_v45, %v885_v51 }
0x10a2   :  { %v899_v54 = vadd.f32 %v898_v52, %v891_v53 }
0x10a4   :  { %906 = vrot.lane.b32.xlu1 %v899_v54, %s3097_s0 }
0x1116   :  { %v907_v55 = vpop.permute.xlu1 %906 }
0x1117   :  { %2487 = vmatmul.mubr.msk.f32.vlgmr.msra.gmra.mrb[6].mxu0 %vm172_vm2, %v907_v55 }
0x1118   :  { %2508 = vmatprep.mubr.msk.f32.mxu0 %vm3093_vm0, %v3094_v1  ;;  %2649 = vmatpush3.bf16.msra.mxu0 %v3408_v39 }
0x1119   :  { %2650 = vmatprep.subr.bf16.mxu0 %v3092_v0 }
0x111c   :  { %2652 = vmatpush3.bf16.msra.mxu0 %v3411_v41 }
0x111d   :  { %2659 = vmatprep.subr.bf16.mxu0 %v3092_v0 }
0x11ea   :  { %v976_v56 = vpop.f32.mrb[6].mxu0 }
0x11eb   :  { %v987_v57 = vadd.f32 %v976_v56, %v3311_v11  ;;  %v2488_v58 = vpop.f32.mrb[7].mxu0  ;;  %v980_v61 = vadd.f32 %v976_v56, %v904_v60  ;;  %v3432_v56 = vld [vmem:[#allocation9] sm:$0x3] }
0x11ec   :  { %vm1148_vm10 = vcmp.gt.s32.totalorder %v3432_v56, 0  ;;  %vm1282_vm11 = vcmp.gt.s32.totalorder %v3432_v56, 1  ;;  %vm1408_vm12 = vcmp.gt.s32.totalorder %v3432_v56, 2  ;;  %vm1534_vm13 = vcmp.gt.s32.totalorder %v3432_v56, 3 }
0x11ed   :  { %989 = vrot.lane.b32.xlu0 %v987_v57, %s3095_s9  ;;  %v2294_v62 = vmul.f32 -1.442695, %v980_v61  ;;  %v1151_v61 = vld [vmem:[#allocation8] sm:$0x3]  ;;  %vm1660_vm14 = vcmp.gt.s32.totalorder %v3432_v56, 4  ;;  %vm1786_vm15 = vcmp.gt.s32.totalorder %v3432_v56, 5 }
0x11ee   :  { %vm2038_vm1 = vcmp.gt.s32.totalorder %v3432_v56, 7 }
0x11ef   :  { %2762 = vpow2.f32 %v2294_v62 }
0x11f1   :  { %1009 = vperm.xlu0 %2725, %v2292_v59  }
0x11f9   :  { %v2763_v63 = vpop.eup %2762 }
0x11fa   :  { %v984_v2 = vadd.f32 1.0, %v2763_v63 }
0x11fc   :  { %2764 = vrcp.f32 %v984_v2 }
0x1206   :  { %v2765_v3 = vpop.eup %2764 }
0x1207   :  { %v999_v15 = vsub.f32 1.0, %v2765_v3  ;;  %v1005_v17 = vmul.f32 %v2765_v3, %v899_v54 }
0x125f   :  { %v990_v4 = vpop.permute.xlu0 %989 }
0x1260   :  { %v992_v6 = vmul.f32 %v2765_v3, %v990_v4 }
0x1262   :  { %994 = vrot.lane.b32.xlu1 %v992_v6, %s3095_s9 }
0x1266   :  { %1016 = vperm.xlu1 %2724, %v1013_v7  }
0x1270   :  { %v1010_v14 = vpop.permute.xlu0 %1009 }
0x12d4   :  { %v995_v9 = vpop.permute.xlu1 %994 }
0x12d5   :  { %v997_v12 = vadd.f32 %v995_v9, %v904_v60  ;;  %v2298_v60 = vsel %vm1148_vm10, 1.0, %v3094_v1 }
0x12d6   :  { %v1268_v9 = vsub.f32 1.0, %v2298_v60 }
0x12d7   :  { %2766 = vtanh.f32 %v997_v12 }
0x12e1   :  { %v2767_v13 = vpop.eup %2766 }
0x12e2   :  { %1001 = vrot.lane.b32.xlu0 %v2767_v13, %s3097_s0 }
0x12e5   :  { %v1017_v19 = vpop.permute.xlu1 %1016 }
0x12e6   :  { %v1019_v21 = vmul.f32 %v1017_v19, %v899_v54 }
0x1354   :  { %v1002_v16 = vpop.permute.xlu0 %1001 }
0x1355   :  { %v1004_v18 = vmul.f32 %v1002_v16, %v999_v15 }
0x1357   :  { %v1006_v20 = vadd.f32 %v1005_v17, %v1004_v18 }
0x1359   :  { %v1012_v22 = vmul.f32 %v1010_v14, %v1006_v20 }
0x135b   :  { %v1020_v23 = vadd.f32 %v1019_v21, %v1012_v22 }
0x135d   :  { %1027 = vrot.lane.b32.xlu1 %v1020_v23, %s3097_s0 }
0x13cf   :  { %v1028_v24 = vpop.permute.xlu1 %1027 }
0x13d0   :  { %2498 = vmatmul.mubr.msk.f32.vlgmr.msra.gmra.mrb[6].mxu1 %vm172_vm2, %v1028_v24 }
0x13d1   :  { %2519 = vmatprep.mubr.msk.f32.mxu1 %vm3093_vm0, %v3094_v1  ;;  %2655 = vmatpush3.bf16.msra.mxu1 %v3408_v39 }
0x13d2   :  { %2656 = vmatprep.subr.bf16.mxu1 %v3092_v0 }
0x13d5   :  { %2658 = vmatpush3.bf16.msra.mxu1 %v3411_v41 }
0x13d6   :  { %2665 = vmatprep.subr.bf16.mxu1 %v3092_v0 }
0x14a3   :  { %v1097_v25 = vpop.f32.mrb[6].mxu1 }
0x14a4   :  { %v1108_v26 = vadd.f32 %v1097_v25, %v3311_v11  ;;  %v2499_v27 = vpop.f32.mrb[7].mxu1  ;;  %v1101_v30 = vadd.f32 %v1097_v25, %v1025_v29 }
0x14a6   :  { %1110 = vrot.lane.b32.xlu0 %v1108_v26, %s3095_s9  ;;  %v2297_v31 = vmul.f32 -1.442695, %v1101_v30  ;;  %v1286_v30 = vld [vmem:[#allocation8 + $0x2] sm:$0x3] }
0x14a8   :  { %2768 = vpow2.f32 %v2297_v31 }
0x14aa   :  { %1130 = vperm.xlu0 %2725, %v2295_v28  }
0x14b2   :  { %v2769_v32 = vpop.eup %2768 }
0x14b3   :  { %v1105_v33 = vadd.f32 1.0, %v2769_v32 }
0x14b5   :  { %2770 = vrcp.f32 %v1105_v33 }
0x14bf   :  { %v2771_v34 = vpop.eup %2770 }
0x14c0   :  { %v1120_v45 = vsub.f32 1.0, %v2771_v34  ;;  %v1126_v47 = vmul.f32 %v2771_v34, %v1020_v23 }
0x1518   :  { %v1111_v5 = vpop.permute.xlu0 %1110 }
0x1519   :  { %v1113_v35 = vmul.f32 %v2771_v34, %v1111_v5 }
0x151b   :  { %1115 = vrot.lane.b32.xlu1 %v1113_v35, %s3095_s9 }
0x151f   :  { %1137 = vperm.xlu1 %2724, %v1134_v36  }
0x1529   :  { %v1131_v43 = vpop.permute.xlu0 %1130 }
0x158d   :  { %v1116_v10 = vpop.permute.xlu1 %1115 }
0x158e   :  { %v1118_v11 = vadd.f32 %v1116_v10, %v1025_v29  ;;  %v2302_v29 = vsel %vm1282_vm11, 1.0, %v3094_v1 }
0x158f   :  { %v1395_v10 = vsub.f32 1.0, %v2302_v29 }
0x1590   :  { %2772 = vtanh.f32 %v1118_v11 }
0x159a   :  { %v2773_v42 = vpop.eup %2772 }
0x159b   :  { %1122 = vrot.lane.b32.xlu0 %v2773_v42, %s3097_s0 }
0x159e   :  { %v1138_v49 = vpop.permute.xlu1 %1137 }
0x159f   :  { %1239 = vrot.lane.b32.xlu0 %v2301_v44, %s3095_s9  ;;  %v1140_v51 = vmul.f32 %v1138_v49, %v1020_v23 }
0x160d   :  { %v1123_v46 = vpop.permute.xlu0 %1122 }
0x160e   :  { %v1125_v48 = vmul.f32 %v1123_v46, %v1120_v45 }
0x1610   :  { %v1127_v50 = vadd.f32 %v1126_v47, %v1125_v48 }
0x1611   :  { %v3430_v55 = vpop.permute.xlu0 %1239 }
0x1612   :  { %v1133_v52 = vmul.f32 %v1131_v43, %v1127_v50 }
0x1614   :  { %v1141_v53 = vadd.f32 %v1140_v51, %v1133_v52 }
0x1616   :  { %1153 = vrot.lane.b32.xlu1 %v1141_v53, %s3097_s0 }
0x1688   :  { %v1154_v54 = vpop.permute.xlu1 %1153 }
0x1689   :  { %2509 = vmatmul.mubr.msk.f32.vlgmr.msra.gmra.mrb[8].mxu0 %vm172_vm2, %v1154_v54  ;;  %v2305_v54 = vsel %vm1408_vm12, 1.0, %v3094_v1 }
0x168a   :  { %2661 = vmatpush3.bf16.msra.mxu0 %v3408_v39  ;;  %2530 = vmatprep.mubr.msk.f32.mxu0 %vm3093_vm0, %v3094_v1 }
0x168b   :  { %2662 = vmatprep.subr.bf16.mxu0 %v3092_v0 }
0x168e   :  { %2664 = vmatpush3.bf16.msra.mxu0 %v3411_v41 }
0x168f   :  { %2671 = vmatprep.subr.bf16.mxu0 %v3092_v0 }
0x175c   :  { %v1223_v57 = vpop.f32.mrb[8].mxu0 }
0x175d   :  { %v1242_v58 = vadd.f32 %v3430_v55, %v1223_v57  ;;  %v2510_v59 = vpop.f32.mrb[9].mxu0  ;;  %v1227_v62 = vadd.f32 %v1223_v57, %v1151_v61  ;;  %v1412_v57 = vld [vmem:[#allocation8 + $0x4] sm:$0x3] }
0x175f   :  { %1244 = vrot.lane.b32.xlu1 %v1242_v58, %s3095_s9  ;;  %v2300_v63 = vmul.f32 -1.442695, %v1227_v62 }
0x1761   :  { %2774 = vpow2.f32 %v2300_v63 }
0x1763   :  { %1264 = vperm.xlu1 %2724, %v2298_v60  }
0x176b   :  { %v2775_v2 = vpop.eup %2774 }
0x176c   :  { %v1231_v3 = vadd.f32 1.0, %v2775_v2 }
0x176e   :  { %2776 = vrcp.f32 %v1231_v3  ;;  %v1521_v3 = vsub.f32 1.0, %v2305_v54 }
0x1778   :  { %v2777_v4 = vpop.eup %2776 }
0x1779   :  { %v1254_v16 = vsub.f32 1.0, %v2777_v4  ;;  %v1260_v18 = vmul.f32 %v2777_v4, %v1141_v53 }
0x17d1   :  { %v1245_v6 = vpop.permute.xlu1 %1244 }
0x17d2   :  { %v1247_v7 = vmul.f32 %v2777_v4, %v1245_v6 }
0x17d4   :  { %1249 = vrot.lane.b32.xlu0 %v1247_v7, %s3095_s9 }
0x17d8   :  { %1271 = vperm.xlu0 %2725, %v1268_v9  }
0x17e2   :  { %v1265_v15 = vpop.permute.xlu1 %1264 }
0x1846   :  { %v1250_v12 = vpop.permute.xlu0 %1249 }
0x1847   :  { %v1252_v13 = vadd.f32 %v1250_v12, %v1151_v61 }
0x1849   :  { %2778 = vtanh.f32 %v1252_v13 }
0x1853   :  { %v2779_v14 = vpop.eup %2778 }
0x1854   :  { %1256 = vrot.lane.b32.xlu1 %v2779_v14, %s3097_s0 }
0x1857   :  { %v1272_v20 = vpop.permute.xlu0 %1271 }
0x1858   :  { %v1274_v22 = vmul.f32 %v1272_v20, %v1141_v53 }
0x18c6   :  { %v1257_v17 = vpop.permute.xlu1 %1256 }
0x18c7   :  { %v1259_v19 = vmul.f32 %v1257_v17, %v1254_v16 }
0x18c9   :  { %v1261_v21 = vadd.f32 %v1260_v18, %v1259_v19 }
0x18cb   :  { %v3440_v23 = vmul.f32 %v1265_v15, %v1261_v21 }
0x18cd   :  { %v1275_v24 = vadd.f32 %v1274_v22, %v3440_v23 }
0x18cf   :  { %1288 = vrot.lane.b32.xlu0 %v1275_v24, %s3097_s0 }
0x1941   :  { %v1289_v25 = vpop.permute.xlu0 %1288 }
0x1942   :  { %2520 = vmatmul.mubr.msk.f32.vlgmr.msra.gmra.mrb[8].mxu1 %vm172_vm2, %v1289_v25 }
0x1943   :  { %2667 = vmatpush3.bf16.msra.mxu1 %v3408_v39  ;;  %2541 = vmatprep.mubr.msk.f32.mxu1 %vm3093_vm0, %v3094_v1 }
0x1944   :  { %2668 = vmatprep.subr.bf16.mxu1 %v3092_v0 }
0x1947   :  { %2670 = vmatpush3.bf16.msra.mxu1 %v3411_v41 }
0x1948   :  { %2677 = vmatprep.subr.bf16.mxu1 %v3092_v0 }
0x1a15   :  { %v1358_v26 = vpop.f32.mrb[8].mxu1 }
0x1a16   :  { %v1369_v27 = vadd.f32 %v1358_v26, %v3430_v55  ;;  %v2521_v28 = vpop.f32.mrb[9].mxu1  ;;  %v1362_v31 = vadd.f32 %v1358_v26, %v1286_v30  ;;  %v2308_v26 = vsel %vm1534_vm13, 1.0, %v3094_v1 }
0x1a18   :  { %1371 = vrot.lane.b32.xlu1 %v1369_v27, %s3095_s9  ;;  %v2304_v32 = vmul.f32 -1.442695, %v1362_v31  ;;  %v1538_v27 = vld [vmem:[#allocation8 + $0x6] sm:$0x3] }
0x1a1a   :  { %2780 = vpow2.f32 %v2304_v32 }
0x1a1c   :  { %1391 = vperm.xlu1 %2724, %v2302_v29  }
0x1a24   :  { %v2781_v33 = vpop.eup %2780 }
0x1a25   :  { %v1366_v34 = vadd.f32 1.0, %v2781_v33 }
0x1a27   :  { %2782 = vrcp.f32 %v1366_v34 }
0x1a31   :  { %v2783_v5 = vpop.eup %2782 }
0x1a32   :  { %v1381_v40 = vsub.f32 1.0, %v2783_v5  ;;  %v1387_v43 = vmul.f32 %v2783_v5, %v1275_v24 }
0x1a8a   :  { %v1372_v35 = vpop.permute.xlu1 %1371 }
0x1a8b   :  { %v1374_v36 = vmul.f32 %v2783_v5, %v1372_v35  ;;  %v1647_v5 = vsub.f32 1.0, %v2308_v26 }
0x1a8d   :  { %1376 = vrot.lane.b32.xlu0 %v1374_v36, %s3095_s9 }
0x1a91   :  { %1398 = vperm.xlu0 %2725, %v1395_v10  }
0x1a9b   :  { %v1392_v8 = vpop.permute.xlu1 %1391 }
0x1aff   :  { %v1377_v11 = vpop.permute.xlu0 %1376 }
0x1b00   :  { %v1379_v37 = vadd.f32 %v1377_v11, %v1286_v30 }
0x1b02   :  { %2784 = vtanh.f32 %v1379_v37 }
0x1b0c   :  { %v2785_v38 = vpop.eup %2784 }
0x1b0d   :  { %1383 = vrot.lane.b32.xlu1 %v2785_v38, %s3097_s0 }
0x1b10   :  { %v1399_v45 = vpop.permute.xlu0 %1398 }
0x1b11   :  { %v1401_v47 = vmul.f32 %v1399_v45, %v1275_v24 }
0x1b7f   :  { %v1384_v42 = vpop.permute.xlu1 %1383 }
0x1b80   :  { %v1386_v44 = vmul.f32 %v1384_v42, %v1381_v40 }
0x1b82   :  { %v1388_v46 = vadd.f32 %v1387_v43, %v1386_v44 }
0x1b84   :  { %v3457_v48 = vmul.f32 %v1392_v8, %v1388_v46 }
0x1b86   :  { %v1402_v49 = vadd.f32 %v1401_v47, %v3457_v48 }
0x1b88   :  { %1414 = vrot.lane.b32.xlu0 %v1402_v49, %s3097_s0 }
0x1bfa   :  { %v1415_v50 = vpop.permute.xlu0 %1414 }
0x1bfb   :  { %2531 = vmatmul.mubr.msk.f32.vlgmr.msra.gmra.mrb[10].mxu0 %vm172_vm2, %v1415_v50 }
0x1bfc   :  { %2673 = vmatpush3.bf16.msra.mxu0 %v3408_v39  ;;  %2552 = vmatprep.mubr.msk.f32.mxu0 %vm3093_vm0, %v3094_v1 }
0x1bfd   :  { %2674 = vmatprep.subr.bf16.mxu0 %v3092_v0 }
0x1c00   :  { %2676 = vmatpush3.bf16.msra.mxu0 %v3411_v41 }
0x1c01   :  { %2683 = vmatprep.subr.bf16.mxu0 %v3092_v0 }
0x1cce   :  { %v1484_v51 = vpop.f32.mrb[10].mxu0 }
0x1ccf   :  { %v1495_v52 = vadd.f32 %v1484_v51, %v3430_v55  ;;  %v2532_v53 = vpop.f32.mrb[11].mxu0  ;;  %v1488_v58 = vadd.f32 %v1484_v51, %v1412_v57 }
0x1cd0   :  { %v1664_v53 = vld [vmem:[#allocation8 + $0x8] sm:$0x3] }
0x1cd1   :  { %1497 = vrot.lane.b32.xlu1 %v1495_v52, %s3095_s9  ;;  %v2307_v59 = vmul.f32 -1.442695, %v1488_v58  ;;  %v2311_v52 = vsel %vm1660_vm14, 1.0, %v3094_v1 }
0x1cd3   :  { %2786 = vpow2.f32 %v2307_v59 }
0x1cd5   :  { %1517 = vperm.xlu1 %2724, %v2305_v54  }
0x1cdd   :  { %v2787_v60 = vpop.eup %2786 }
0x1cde   :  { %v1492_v61 = vadd.f32 1.0, %v2787_v60 }
0x1ce0   :  { %2788 = vrcp.f32 %v1492_v61 }
0x1cea   :  { %v2789_v62 = vpop.eup %2788 }
0x1ceb   :  { %v1507_v12 = vsub.f32 1.0, %v2789_v62  ;;  %v1513_v14 = vmul.f32 %v2789_v62, %v1402_v49 }
0x1d43   :  { %v1498_v63 = vpop.permute.xlu1 %1497 }
0x1d44   :  { %v1500_v2 = vmul.f32 %v2789_v62, %v1498_v63  ;;  %v1773_v63 = vsub.f32 1.0, %v2311_v52 }
0x1d46   :  { %1502 = vrot.lane.b32.xlu0 %v1500_v2, %s3095_s9 }
0x1d4a   :  { %1524 = vperm.xlu0 %2725, %v1521_v3  }
0x1d54   :  { %v1518_v9 = vpop.permute.xlu1 %1517 }
0x1db8   :  { %v1503_v4 = vpop.permute.xlu0 %1502 }
0x1db9   :  { %v1505_v6 = vadd.f32 %v1503_v4, %v1412_v57 }
0x1dbb   :  { %2790 = vtanh.f32 %v1505_v6 }
0x1dc5   :  { %v2791_v7 = vpop.eup %2790 }
0x1dc6   :  { %1509 = vrot.lane.b32.xlu1 %v2791_v7, %s3097_s0 }
0x1dc9   :  { %v1525_v16 = vpop.permute.xlu0 %1524 }
0x1dca   :  { %v1527_v18 = vmul.f32 %v1525_v16, %v1402_v49 }
0x1e38   :  { %v1510_v13 = vpop.permute.xlu1 %1509 }
0x1e39   :  { %v1512_v15 = vmul.f32 %v1510_v13, %v1507_v12 }
0x1e3b   :  { %v1514_v17 = vadd.f32 %v1513_v14, %v1512_v15 }
0x1e3d   :  { %v3474_v19 = vmul.f32 %v1518_v9, %v1514_v17 }
0x1e3f   :  { %v1528_v20 = vadd.f32 %v1527_v18, %v3474_v19 }
0x1e41   :  { %1540 = vrot.lane.b32.xlu0 %v1528_v20, %s3097_s0 }
0x1eb3   :  { %v1541_v21 = vpop.permute.xlu0 %1540 }
0x1eb4   :  { %2542 = vmatmul.mubr.msk.f32.vlgmr.msra.gmra.mrb[10].mxu1 %vm172_vm2, %v1541_v21 }
0x1eb5   :  { %2679 = vmatpush3.bf16.msra.mxu1 %v3408_v39  ;;  %2563 = vmatprep.mubr.msk.f32.mxu1 %vm3093_vm0, %v3094_v1 }
0x1eb6   :  { %2680 = vmatprep.subr.bf16.mxu1 %v3092_v0 }
0x1eb9   :  { %2682 = vmatpush3.bf16.msra.mxu1 %v3411_v41 }
0x1eba   :  { %2689 = vmatprep.subr.bf16.mxu1 %v3092_v0 }
0x1f87   :  { %v1610_v22 = vpop.f32.mrb[10].mxu1 }
0x1f88   :  { %v1621_v24 = vadd.f32 %v1610_v22, %v3430_v55  ;;  %v2543_v25 = vpop.f32.mrb[11].mxu1  ;;  %v1614_v28 = vadd.f32 %v1610_v22, %v1538_v27 }
0x1f89   :  { %v2314_v25 = vsel %vm1786_vm15, 1.0, %v3094_v1 }
0x1f8a   :  { %1623 = vrot.lane.b32.xlu1 %v1621_v24, %s3095_s9  ;;  %v2310_v29 = vmul.f32 -1.442695, %v1614_v28 }
0x1f8c   :  { %2792 = vpow2.f32 %v2310_v29 }
0x1f8e   :  { %1643 = vperm.xlu1 %2724, %v2308_v26   ;;  %v1790_v26 = vld [vmem:[#allocation8 + $0xa] sm:$0x3] }
0x1f96   :  { %v2793_v30 = vpop.eup %2792 }
0x1f97   :  { %v1618_v31 = vadd.f32 1.0, %v2793_v30 }
0x1f99   :  { %2794 = vrcp.f32 %v1618_v31  ;;  %v1899_v31 = vsub.f32 1.0, %v2314_v25 }
0x1fa3   :  { %v2795_v32 = vpop.eup %2794 }
0x1fa4   :  { %v1633_v37 = vsub.f32 1.0, %v2795_v32  ;;  %v1639_v8 = vmul.f32 %v2795_v32, %v1528_v20 }
0x1ffc   :  { %v1624_v33 = vpop.permute.xlu1 %1623 }
0x1ffd   :  { %v1626_v34 = vmul.f32 %v2795_v32, %v1624_v33 }
0x1fff   :  { %1628 = vrot.lane.b32.xlu0 %v1626_v34, %s3095_s9 }
0x2003   :  { %1650 = vperm.xlu0 %2725, %v1647_v5  }
0x200d   :  { %v1644_v11 = vpop.permute.xlu1 %1643 }
0x2071   :  { %v1629_v35 = vpop.permute.xlu0 %1628 }
0x2072   :  { %v1631_v36 = vadd.f32 %v1629_v35, %v1538_v27 }
0x2074   :  { %2796 = vtanh.f32 %v1631_v36 }
0x207e   :  { %v2797_v10 = vpop.eup %2796 }
0x207f   :  { %1635 = vrot.lane.b32.xlu1 %v2797_v10, %s3097_s0 }
0x2082   :  { %v1651_v42 = vpop.permute.xlu0 %1650 }
0x2083   :  { %v1653_v44 = vmul.f32 %v1651_v42, %v1528_v20 }
0x20f1   :  { %v1636_v38 = vpop.permute.xlu1 %1635 }
0x20f2   :  { %v1638_v40 = vmul.f32 %v1636_v38, %v1633_v37 }
0x20f4   :  { %v1640_v43 = vadd.f32 %v1639_v8, %v1638_v40 }
0x20f6   :  { %v3491_v45 = vmul.f32 %v1644_v11, %v1640_v43 }
0x20f8   :  { %v1654_v46 = vadd.f32 %v1653_v44, %v3491_v45 }
0x20fa   :  { %1666 = vrot.lane.b32.xlu0 %v1654_v46, %s3097_s0 }
0x216c   :  { %v1667_v47 = vpop.permute.xlu0 %1666 }
0x216d   :  { %2553 = vmatmul.mubr.msk.f32.vlgmr.msra.gmra.mrb[12].mxu0 %vm172_vm2, %v1667_v47 }
0x216e   :  { %2685 = vmatpush3.bf16.msra.mxu0 %v3408_v39  ;;  %2574 = vmatprep.mubr.msk.f32.mxu0 %vm3093_vm0, %v3094_v1 }
0x216f   :  { %2686 = vmatprep.subr.bf16.mxu0 %v3092_v0 }
0x2172   :  { %2688 = vmatpush3.bf16.msra.mxu0 %v3411_v41 }
0x2240   :  { %v1736_v49 = vpop.f32.mrb[12].mxu0 }
0x2241   :  { %v1747_v50 = vadd.f32 %v1736_v49, %v3430_v55  ;;  %v2554_v51 = vpop.f32.mrb[13].mxu0  ;;  %v1740_v54 = vadd.f32 %v1736_v49, %v1664_v53 }
0x2243   :  { %1749 = vrot.lane.b32.xlu1 %v1747_v50, %s3095_s9  ;;  %v2313_v57 = vmul.f32 -1.442695, %v1740_v54  ;;  %v1916_v50 = vld [vmem:[#allocation8 + $0xc] sm:$0x3] }
0x2245   :  { %2798 = vpow2.f32 %v2313_v57 }
0x2247   :  { %1769 = vperm.xlu1 %2724, %v2311_v52  }
0x224f   :  { %v2799_v58 = vpop.eup %2798 }
0x2250   :  { %v1744_v59 = vadd.f32 1.0, %v2799_v58 }
0x2252   :  { %2800 = vrcp.f32 %v1744_v59 }
0x225c   :  { %v2801_v60 = vpop.eup %2800 }
0x225d   :  { %v1759_v7 = vsub.f32 1.0, %v2801_v60  ;;  %v1765_v12 = vmul.f32 %v2801_v60, %v1654_v46 }
0x22b5   :  { %v1750_v61 = vpop.permute.xlu1 %1749 }
0x22b6   :  { %v1752_v62 = vmul.f32 %v2801_v60, %v1750_v61 }
0x22b8   :  { %1754 = vrot.lane.b32.xlu0 %v1752_v62, %s3095_s9 }
0x22bc   :  { %1776 = vperm.xlu0 %2725, %v1773_v63  }
0x22c6   :  { %v1770_v6 = vpop.permute.xlu1 %1769 }
0x232a   :  { %v1755_v2 = vpop.permute.xlu0 %1754 }
0x232b   :  { %v1757_v3 = vadd.f32 %v1755_v2, %v1664_v53 }
0x232d   :  { %2802 = vtanh.f32 %v1757_v3 }
0x2337   :  { %v2803_v4 = vpop.eup %2802 }
0x2338   :  { %1761 = vrot.lane.b32.xlu1 %v2803_v4, %s3097_s0 }
0x233b   :  { %v1777_v14 = vpop.permute.xlu0 %1776 }
0x233c   :  { %v1779_v16 = vmul.f32 %v1777_v14, %v1654_v46 }
0x23aa   :  { %v1762_v9 = vpop.permute.xlu1 %1761 }
0x23ab   :  { %v1764_v13 = vmul.f32 %v1762_v9, %v1759_v7 }
0x23ad   :  { %v1766_v15 = vadd.f32 %v1765_v12, %v1764_v13 }
0x23af   :  { %v3507_v17 = vmul.f32 %v1770_v6, %v1766_v15 }
0x23b1   :  { %v1780_v18 = vadd.f32 %v1779_v16, %v3507_v17 }
0x23b3   :  { %1792 = vrot.lane.b32.xlu0 %v1780_v18, %s3097_s0 }
0x2425   :  { %v1793_v20 = vpop.permute.xlu0 %1792 }
0x2426   :  { %2564 = vmatmul.mubr.msk.f32.vlgmr.msra.gmra.mrb[12].mxu1 %vm172_vm2, %v1793_v20 }
0x2427   :  { %2691 = vmatpush3.bf16.msra.mxu1 %v3408_v39  ;;  %2585 = vmatprep.mubr.msk.f32.mxu1 %vm3093_vm0, %v3094_v1  ;;  %vm1912_vm0 = vcmp.gt.s32.totalorder %v3432_v56, 6 }
0x2428   :  { %2692 = vmatprep.subr.bf16.mxu1 %v3092_v0  ;;  %v2317_v49 = vsel %vm1912_vm0, 1.0, %v3094_v1 }
0x2429   :  { %v2025_v60 = vsub.f32 1.0, %v2317_v49 }
0x242b   :  { %2694 = vmatpush3.bf16.msra.mxu1 %v3411_v41 }
0x24f9   :  { %v1862_v21 = vpop.f32.mrb[12].mxu1 }
0x24fa   :  { %v1873_v22 = vadd.f32 %v1862_v21, %v3430_v55  ;;  %v2565_v24 = vpop.f32.mrb[13].mxu1  ;;  %v1866_v39 = vadd.f32 %v1862_v21, %v1790_v26 }
0x24fc   :  { %1875 = vrot.lane.b32.xlu1 %v1873_v22, %s3095_s9  ;;  %v2316_v27 = vmul.f32 -1.442695, %v1866_v39  ;;  %v2320_v22 = vsel %vm2038_vm1, 1.0, %v3094_v1 }
0x24fe   :  { %2804 = vpow2.f32 %v2316_v27 }
0x2500   :  { %1895 = vperm.xlu1 %2724, %v2314_v25  }
0x2508   :  { %v2805_v28 = vpop.eup %2804 }
0x2509   :  { %v1870_v29 = vadd.f32 1.0, %v2805_v28 }
0x250b   :  { %2806 = vrcp.f32 %v1870_v29 }
0x2515   :  { %v2807_v0 = vpop.eup %2806 }
0x2516   :  { %v1885_v35 = vsub.f32 1.0, %v2807_v0  ;;  %v1891_v10 = vmul.f32 %v2807_v0, %v1780_v18 }
0x256e   :  { %v1876_v41 = vpop.permute.xlu1 %1875 }
0x256f   :  { %v1878_v30 = vmul.f32 %v2807_v0, %v1876_v41 }
0x2571   :  { %1880 = vrot.lane.b32.xlu0 %v1878_v30, %s3095_s9 }
0x2575   :  { %1902 = vperm.xlu0 %2725, %v1899_v31   ;;  %v2158_v31 = vld [vmem:[#allocation17] sm:$0xff] }
0x257f   :  { %v1896_v5 = vpop.permute.xlu1 %1895 }
0x25e3   :  { %v1881_v32 = vpop.permute.xlu0 %1880 }
0x25e4   :  { %v1883_v33 = vadd.f32 %v1881_v32, %v1790_v26  ;;  %v2159_v32 = vld [vmem:[#allocation17 + $0x8] sm:$0xff] }
0x25e6   :  { %2808 = vtanh.f32 %v1883_v33  ;;  %v2695_v33 = vpack.c.bf16 %v2159_v32, %v2158_v31 }
0x25e8   :  { %2696 = vmatprep.subr.bf16.mxu0 %v2695_v33 }
0x25f0   :  { %v2809_v34 = vpop.eup %2808 }
0x25f1   :  { %1887 = vrot.lane.b32.xlu1 %v2809_v34, %s3097_s0  ;;  %v2160_v34 = vld [vmem:[#allocation17 + $0x10] sm:$0xff] }
0x25f4   :  { %v1903_v37 = vpop.permute.xlu0 %1902 }
0x25f5   :  { %v1905_v8 = vmul.f32 %v1903_v37, %v1780_v18 }
0x2663   :  { %v1888_v36 = vpop.permute.xlu1 %1887 }
0x2664   :  { %v1890_v11 = vmul.f32 %v1888_v36, %v1885_v35 }
0x2666   :  { %v1892_v38 = vadd.f32 %v1891_v10, %v1890_v11 }
0x2668   :  { %v3523_v40 = vmul.f32 %v1896_v5, %v1892_v38  ;;  %v2161_v5 = vld [vmem:[#allocation17 + $0x18] sm:$0xff] }
0x2669   :  { %v2699_v35 = vpack.c.bf16 %v2161_v5, %v2160_v34 }
0x266a   :  { %v1906_v42 = vadd.f32 %v1905_v8, %v3523_v40 }
0x266c   :  { %1918 = vrot.lane.b32.xlu0 %v1906_v42, %s3097_s0 }
0x26de   :  { %v1919_v43 = vpop.permute.xlu0 %1918 }
0x26df   :  { %2575 = vmatmul.mubr.msk.f32.vlgmr.msra.gmra.mrb[14].mxu0 %vm172_vm2, %v1919_v43 }
0x26e0   :  { %2698 = vmatpush3.bf16.msra.mxu0 %v2695_v33 }
0x26e1   :  { %2700 = vmatprep.subr.bf16.mxu0 %v2699_v35 }
0x26e4   :  { %2702 = vmatpush3.bf16.msra.mxu0 %v2699_v35 }
0x27b2   :  { %v1988_v44 = vpop.f32.mrb[14].mxu0 }
0x27b3   :  { %v1999_v46 = vadd.f32 %v1988_v44, %v3430_v55  ;;  %v2576_v47 = vpop.f32.mrb[15].mxu0  ;;  %v1992_v51 = vadd.f32 %v1988_v44, %v1916_v50 }
0x27b5   :  { %2001 = vrot.lane.b32.xlu1 %v1999_v46, %s3095_s9  ;;  %v2319_v52 = vmul.f32 -1.442695, %v1992_v51  ;;  %v2323_v46 = vld [vmem:[#allocation18] ss:$0 sm:$0xff] }
0x27b7   :  { %2810 = vpow2.f32 %v2319_v52 }
0x27b9   :  { %2021 = vperm.xlu1 %2724, %v2317_v49  }
0x27c1   :  { %v2811_v53 = vpop.eup %2810 }
0x27c2   :  { %v1996_v54 = vadd.f32 1.0, %v2811_v53 }
0x27c4   :  { %2812 = vrcp.f32 %v1996_v54 }
0x27ce   :  { %v2813_v57 = vpop.eup %2812 }
0x27cf   :  { %v2011_v3 = vsub.f32 1.0, %v2813_v57  ;;  %v2017_v6 = vmul.f32 %v2813_v57, %v1906_v42 }
0x2827   :  { %v2002_v58 = vpop.permute.xlu1 %2001 }
0x2828   :  { %v2004_v59 = vmul.f32 %v2813_v57, %v2002_v58 }
0x282a   :  { %2006 = vrot.lane.b32.xlu0 %v2004_v59, %s3095_s9 }
0x282e   :  { %2028 = vperm.xlu0 %2725, %v2025_v60  }
0x2838   :  { %v2022_v2 = vpop.permute.xlu1 %2021 }
0x289c   :  { %v2007_v61 = vpop.permute.xlu0 %2006 }
0x289d   :  { %v2009_v62 = vadd.f32 %v2007_v61, %v1916_v50 }
0x289f   :  { %2814 = vtanh.f32 %v2009_v62 }
0x28a9   :  { %v2815_v63 = vpop.eup %2814 }
0x28aa   :  { %2013 = vrot.lane.b32.xlu1 %v2815_v63, %s3097_s0 }
0x28ad   :  { %v2029_v9 = vpop.permute.xlu0 %2028 }
0x28ae   :  { %v2031_v13 = vmul.f32 %v2029_v9, %v1906_v42 }
0x291c   :  { %v2014_v4 = vpop.permute.xlu1 %2013 }
0x291d   :  { %v2016_v7 = vmul.f32 %v2014_v4, %v2011_v3 }
0x291f   :  { %v2018_v12 = vadd.f32 %v2017_v6, %v2016_v7 }
0x2921   :  { %v2024_v14 = vmul.f32 %v2022_v2, %v2018_v12 }
0x2923   :  { %v2032_v15 = vadd.f32 %v2031_v13, %v2024_v14 }
0x2925   :  { %2044 = vrot.lane.b32.xlu0 %v2032_v15, %s3097_s0 }
0x2997   :  { %v2045_v16 = vpop.permute.xlu0 %2044 }
0x2998   :  { %2586 = vmatmul.mubr.msk.f32.vlgmr.msra.gmra.mrb[14].mxu1 %vm172_vm2, %v2045_v16 }
0x2a6b   :  { %v2114_v18 = vpop.f32.mrb[14].mxu1 }
0x2a6c   :  { %v2125_v20 = vadd.f32 %v2114_v18, %v3430_v55  ;;  %v2587_v21 = vpop.f32.mrb[15].mxu1  ;;  %v2042_v55 = vld [vmem:[#allocation8 + $0xe] sm:$0x3] }
0x2a6d   :  { %v2118_v24 = vadd.f32 %v2114_v18, %v2042_v55 }
0x2a6e   :  { %2127 = vrot.lane.b32.xlu1 %v2125_v20, %s3095_s9 }
0x2a6f   :  { %v2322_v25 = vmul.f32 -1.442695, %v2118_v24 }
0x2a71   :  { %2816 = vpow2.f32 %v2322_v25 }
0x2a72   :  { %2147 = vperm.xlu1 %2724, %v2320_v22  }
0x2a76   :  { %1277 = vrot.lane.b32.xlu1 %v3440_v23, %s3097_s0 }
0x2a7a   :  { %1530 = vrot.lane.b32.xlu1 %v3474_v19, %s3097_s0 }
0x2a7b   :  { %v2817_v56 = vpop.eup %2816 }
0x2a7c   :  { %v2122_v26 = vadd.f32 1.0, %v2817_v56 }
0x2a7e   :  { %1782 = vrot.lane.b32.xlu1 %v3507_v17, %s3097_s0  ;;  %2818 = vrcp.f32 %v2122_v26 }
0x2a82   :  { %2034 = vrot.lane.b32.xlu1 %v2024_v14, %s3097_s0 }
0x2a88   :  { %v2819_v1 = vpop.eup %2818 }
0x2a89   :  { %v2137_v36 = vsub.f32 1.0, %v2819_v1  ;;  %v2143_v11 = vmul.f32 %v2819_v1, %v2032_v15 }
0x2ae0   :  { %v2128_v39 = vpop.permute.xlu1 %2127 }
0x2ae1   :  { %v2130_v27 = vmul.f32 %v2819_v1, %v2128_v39 }
0x2ae3   :  { %2132 = vrot.lane.b32.xlu0 %v2130_v27, %s3095_s9 }
0x2af1   :  { %v2148_v23 = vpop.permute.xlu1 %2147 }
0x2af5   :  { %v1278_v19 = vpop.permute.xlu1 %1277 }
0x2af6   :  { %1281 = vst.msk [vmem:[#allocation2] sm:$0x3] %vm1280_vm3, %v1278_v19 }
0x2af9   :  { %v1531_v17 = vpop.permute.xlu1 %1530 }
0x2afa   :  { %1533 = vst.msk [vmem:[#allocation2 + $0x4] sm:$0x3] %vm1280_vm3, %v1531_v17 }
0x2afd   :  { %v1783_v28 = vpop.permute.xlu1 %1782 }
0x2afe   :  { %1785 = vst.msk [vmem:[#allocation2 + $0x8] sm:$0x3] %vm1280_vm3, %v1783_v28 }
0x2b01   :  { %v2035_v29 = vpop.permute.xlu1 %2034 }
0x2b02   :  { %2037 = vst.msk [vmem:[#allocation2 + $0xc] sm:$0x3] %vm1280_vm3, %v2035_v29 }
0x2b55   :  { %v2133_v0 = vpop.permute.xlu0 %2132 }
0x2b56   :  { %v2135_v41 = vadd.f32 %v2133_v0, %v2042_v55 }
0x2b58   :  { %2820 = vtanh.f32 %v2135_v41 }
0x2b62   :  { %v2821_v30 = vpop.eup %2820 }
0x2b63   :  { %2139 = vrot.lane.b32.xlu0 %v2821_v30, %s3097_s0 }
0x2b67   :  { %1404 = vrot.lane.b32.xlu0 %v3457_v48, %s3097_s0 }
0x2b6b   :  { %1656 = vrot.lane.b32.xlu0 %v3491_v45, %s3097_s0 }
0x2b6f   :  { %1908 = vrot.lane.b32.xlu0 %v3523_v40, %s3097_s0 }
0x2bd5   :  { %v2140_v10 = vpop.permute.xlu0 %2139 }
0x2bd6   :  { %v2142_v48 = vmul.f32 %v2140_v10, %v2137_v36 }
0x2bd8   :  { %v2144_v37 = vadd.f32 %v2143_v11, %v2142_v48 }
0x2bd9   :  { %v1405_v38 = vpop.permute.xlu0 %1404 }
0x2bda   :  { %v2150_v45 = vmul.f32 %v2148_v23, %v2144_v37  ;;  %1407 = vst.msk [vmem:[#allocation2 + $0x2] sm:$0x3] %vm1280_vm3, %v1405_v38 }
0x2bdc   :  { %2152 = vrot.lane.b32.xlu0 %v2150_v45, %s3097_s0 }
0x2bdd   :  { %v1657_v8 = vpop.permute.xlu0 %1656 }
0x2bde   :  { %1659 = vst.msk [vmem:[#allocation2 + $0x6] sm:$0x3] %vm1280_vm3, %v1657_v8 }
0x2be1   :  { %v1909_v40 = vpop.permute.xlu0 %1908 }
0x2be2   :  { %1911 = vst.msk [vmem:[#allocation2 + $0xa] sm:$0x3] %vm1280_vm3, %v1909_v40 }
0x2be5   :  { %v2156_v42 = vld [vmem:[#allocation2] sm:$0xff] }
0x2be6   :  { %2596 = vmatprep.mubr.msk.f32.mxu0 %vm172_vm2, %v2156_v42 }
0x2c4e   :  { %v2153_v43 = vpop.permute.xlu0 %2152 }
0x2c4f   :  { %2155 = vst.msk [vmem:[#allocation2 + $0xe] sm:$0x3] %vm1280_vm3, %v2153_v43 }
0x2c56   :  { %v2157_v44 = vld [vmem:[#allocation2 + $0x8] sm:$0xff] }
0x2c57   :  { %2597 = vmatmul.mubr.msk.f32.vlgmr.msra.gmra.mrb[16].mxu0 %vm172_vm2, %v2157_v44 }
0x2d2a   :  { %v2598_v47 = vpop.f32.mrb[16].mxu0 }
0x2d2b   :  { %v2247_v49 = vadd.f32 %v2598_v47, %v2323_v46  ;;  %v2241_v50 = vpop.f32.mrb[17].mxu0 }
0x2d2c   :  { %v2242_v51 = vadd.f32 %v2323_v46, %v2241_v50 }
0x2d2d   :  { %2251 = vst [vmem:[#allocation20 + $0x8] sm:$0xff] %v2247_v49 }
0x2d2e   :  { %2250 = vst [vmem:[#allocation20] sm:$0xff] %v2242_v51 }
0x2d2f   :  { %3053 = shalt.err (!%p3050_p0)
}
0x2d30   :  { %s3054_s25 = scalar_lea.hbm %s3591_s10, 256 }
0x2d31   :  { %p3055_p1 = scmp.ne.s32.totalorder %s3591_s10, %s3054_s25  ;;  %p3058_p2 = scmp.lt.u32.totalorder %s3054_s25, %s3591_s10 }
0x2d33   :  { %p3060_p3 = pnand %p3058_p2, %p3055_p1 }
0x2d35   :  { %3063 = shalt.err (!%p3060_p3)
}
0x2d36   :  { %2263 = dma.vmem_to_hbm [thread:$0]  %s2258_s15, 256, %s3591_s10, [#allocation5], %s3087_s2, %s3087_s2, %s3088_s7  }
0x2d37   :  { %3076 = dma.done.wait [#allocation5], 256  }
0x2d38   :  { %3077 = vsyncadd [#allocation5], 4294967040 }
0x2d39   :  { %2267 = vsyncpa [#allocation4], 1 }
0x2d3a   :  { %2268 = vsyncpa [#allocation7], 1 }
0x2d3b   :  { %2269 = vsyncpa [#allocation10], 1 }
0x2d3c   :  { %2270 = vsyncpa [#allocation13], 1 }
0x2d3d   :  { %2271 = vsyncpa [#allocation16], 1 }
0x2d3e   :  { %2272 = vsyncpa [#allocation19], 1 }
0x2d3f   :  { %2273 = vsyncpa [#allocation5], 1 }

</bundles_post_ra>
